<compile_context>
chip_gen: v7x
topology: tpu7x:2x2x1
jax: 0.10.0
libtpu: 0.0.40
codegen_flags: <defaults>
</compile_context>

<pallas_src>
import jax
import jax.numpy as jnp
from jax import lax
from jax.experimental import pallas as pl
from jax.experimental.pallas import tpu as pltpu

# ---- DeepDSSM hyper-parameters (from the module __init__) ----
WINDOW_SIZE = 3
K = 300          # conv output channels
L = 64           # fc output dim
EMBED_DIM = 8    # small, chosen for the synthetic example
WORD_DEPTH = WINDOW_SIZE * EMBED_DIM

BATCH_TILE = 8   # batch rows per grid step (sublane-aligned)
OUT_LANES = 128  # lane-dense output width


def dssm_kernel(qe_ref, de_ref,
                qcw_ref, qcb_ref, dcw_ref, dcb_ref,
                qfw_ref, qfb_ref, dfw_ref, dfb_ref,
                out_ref):
    """One batch tile: fused n-gram + pointwise conv + tanh + max-pool + fc + cosine sim.

    qe_ref/de_ref : [TB, S, E]        raw word embeddings (channels-last)
    qcw/dcw       : [WORD_DEPTH, K]   conv weights (transposed from torch [K, WD, 1])
    qcb/dcb       : [1, K]            conv bias
    qfw/dfw       : [K, L]            fc weights (transposed from torch [L, K])
    qfb/dfb       : [1, L]            fc bias
    out_ref       : [TB, OUT_LANES]   cosine sims broadcast across lanes (lane-dense store)
    """
    TB, S, E = qe_ref.shape
    Lg = S - WINDOW_SIZE + 1  # n-gram sequence length

    def conv_tanh_maxpool(emb, cw, cb):
        # Conv1d(kernel_size=1) over the n-gram features == sum over window offsets of
        # shifted [TB*Lg, E] x [E, K] matmuls (n-gram never materialized in HBM).
        pre = None
        for w in range(WINDOW_SIZE):
            x = emb[:, w:w + Lg, :].reshape(TB * Lg, E)          # flattened 2-D rows for MXU
            t = jnp.dot(x, cw[w * E:(w + 1) * E, :],
                        preferred_element_type=jnp.float32)
            pre = t if pre is None else pre + t
        act = jnp.tanh(pre + cb)                                  # [TB*Lg, K]
        return jnp.max(act.reshape(TB, Lg, -1), axis=1)           # [TB, K] max-pool over seq

    qe = qe_ref[...]
    de = de_ref[...]

    q_feat = conv_tanh_maxpool(qe, qcw_ref[...], qcb_ref[...])    # [TB, K]
    d_feat = conv_tanh_maxpool(de, dcw_ref[...], dcb_ref[...])    # [TB, K]

    # fully connected -> [TB, L]
    q_sem = jnp.dot(q_feat, qfw_ref[...], preferred_element_type=jnp.float32) + qfb_ref[...]
    d_sem = jnp.dot(d_feat, dfw_ref[...], preferred_element_type=jnp.float32) + dfb_ref[...]

    # cosine similarity via rsqrt (matches F.normalize(p=2, dim=1, eps=1e-12):
    # clamping the norm at 1e-12 == clamping the squared norm at 1e-24).
    dot_qd = jnp.sum(q_sem * d_sem, axis=1, keepdims=True)        # [TB, 1]
    qq = jnp.sum(q_sem * q_sem, axis=1, keepdims=True)
    dd = jnp.sum(d_sem * d_sem, axis=1, keepdims=True)
    sims = dot_qd * lax.rsqrt(jnp.maximum(qq, 1e-24)) * lax.rsqrt(jnp.maximum(dd, 1e-24))

    # lane-dense, unmasked store; wrapper reads column 0.
    out_ref[...] = jnp.broadcast_to(sims, out_ref.shape)


def _const_spec(shape):
    """Full-array block, constant index_map -> DMA once, stays VMEM-resident across grid."""
    return pl.BlockSpec(shape, lambda i: (0,) * len(shape))


def deep_dssm_forward(qs, ds, params, batch_tile=BATCH_TILE):
    """Embedding lookup in plain JAX; everything downstream fused in one gridded Pallas call."""
    # TODO(synk): fuse the (tiny) embedding-table gather into the kernel via scalar-prefetched
    #             token ids + a VMEM-resident table; kept in XLA here for lowering robustness.
    # NOTE: mirrors the torch code exactly — ds is embedded with the *query* table.
    q_emb = params['q_embed'][qs]          # [B, S, E]
    d_emb = params['q_embed'][ds]          # [B, S, E]
    B, S, E = q_emb.shape

    # Pad batch to a multiple of the tile; padded rows produce discarded outputs only.
    n_tiles = pl.cdiv(B, batch_tile)
    B_pad = n_tiles * batch_tile
    if B_pad != B:
        pad = ((0, B_pad - B), (0, 0), (0, 0))
        q_emb = jnp.pad(q_emb, pad)
        d_emb = jnp.pad(d_emb, pad)

    emb_spec = pl.BlockSpec((batch_tile, S, E), lambda i: (i, 0, 0))

    out = pl.pallas_call(
        dssm_kernel,
        out_shape=jax.ShapeDtypeStruct((B_pad, OUT_LANES), jnp.float32),
        grid=(n_tiles,),
        in_specs=[
            emb_spec, emb_spec,
            _const_spec((WORD_DEPTH, K)), _const_spec((1, K)),   # q conv
            _const_spec((WORD_DEPTH, K)), _const_spec((1, K)),   # d conv
            _const_spec((K, L)), _const_spec((1, L)),            # q fc
            _const_spec((K, L)), _const_spec((1, L)),            # d fc
        ],
        out_specs=pl.BlockSpec((batch_tile, OUT_LANES), lambda i: (i, 0)),
        compiler_params=pltpu.CompilerParams(
            dimension_semantics=("parallel",),        # shard batch tiles across TCs (v7x)
            vmem_limit_bytes=32 * 1024 * 1024,        # safe on v5e/v6e/v7x; usage is << this
        ),
    )(q_emb, d_emb,
      params['q_conv_w'], params['q_conv_b'],
      params['d_conv_w'], params['d_conv_b'],
      params['q_fc_w'], params['q_fc_b'],
      params['d_fc_w'], params['d_fc_b'])

    return out[:B, 0]                      # [B]


# ----------------------------- reference & setup -----------------------------

def generate_n_gram(emb, window=WINDOW_SIZE):
    """[B, S, E] -> [B, S-window+1, window*E] (channels-last n-gram features)."""
    S = emb.shape[1]
    parts = [emb[:, i:S - window + i + 1, :] for i in range(window)]
    return jnp.concatenate(parts, axis=2)


def reference_forward(qs, ds, params):
    """Pure-JAX reference of the same forward pass (for correctness check)."""
    q_emb = params['q_embed'][qs]
    d_emb = params['q_embed'][ds]
    qn = generate_n_gram(q_emb)
    dn = generate_n_gram(d_emb)
    q_conv = jnp.tanh(jnp.einsum('blw,wk->blk', qn, params['q_conv_w']) + params['q_conv_b'])
    d_conv = jnp.tanh(jnp.einsum('blw,wk->blk', dn, params['d_conv_w']) + params['d_conv_b'])
    q_maxp = jnp.max(q_conv, axis=1)
    d_maxp = jnp.max(d_conv, axis=1)
    q_sem = q_maxp @ params['q_fc_w'] + params['q_fc_b']
    d_sem = d_maxp @ params['d_fc_w'] + params['d_fc_b']
    qx = q_sem / jnp.maximum(jnp.linalg.norm(q_sem, axis=1, keepdims=True), 1e-12)
    dx = d_sem / jnp.maximum(jnp.linalg.norm(d_sem, axis=1, keepdims=True), 1e-12)
    return jnp.sum(qx * dx, axis=1)


def init_params(key, q_vocab, d_vocab):
    ks = jax.random.split(key, 10)
    scale = 0.1
    return {
        'q_embed':  jax.random.normal(ks[0], (q_vocab, EMBED_DIM), jnp.float32),
        # d_embed allocated but unused — mirrors the PyTorch forward, which embeds ds with
        # the query table. Do not "fix" silently.
        'd_embed':  jax.random.normal(ks[1], (d_vocab, EMBED_DIM), jnp.float32),
        # torch Conv1d weight [K, WORD_DEPTH, 1] -> stored transposed [WORD_DEPTH, K]
        'q_conv_w': scale * jax.random.normal(ks[2], (WORD_DEPTH, K), jnp.float32),
        'q_conv_b': scale * jax.random.normal(ks[3], (1, K), jnp.float32),
        'd_conv_w': scale * jax.random.normal(ks[4], (WORD_DEPTH, K), jnp.float32),
        'd_conv_b': scale * jax.random.normal(ks[5], (1, K), jnp.float32),
        # torch Linear weight [L, K] -> stored transposed [K, L]
        'q_fc_w':   scale * jax.random.normal(ks[6], (K, L), jnp.float32),
        'q_fc_b':   scale * jax.random.normal(ks[7], (1, L), jnp.float32),
        'd_fc_w':   scale * jax.random.normal(ks[8], (K, L), jnp.float32),
        'd_fc_b':   scale * jax.random.normal(ks[9], (1, L), jnp.float32),
    }


if __name__ == "__main__":
    key = jax.random.PRNGKey(0)
    k_param, k_q, k_d = jax.random.split(key, 3)

    # B=12 exercises both a multi-step grid (2 tiles of 8) and the padded last tile.
    B, SEQ = 12, 10
    Q_VOCAB, D_VOCAB = 50, 60

    params = init_params(k_param, Q_VOCAB, D_VOCAB)
    # token ids (ds also indexed into the q table, as in the torch forward)
    qs = jax.random.randint(k_q, (B, SEQ), 0, Q_VOCAB, dtype=jnp.int32)
    ds = jax.random.randint(k_d, (B, SEQ), 0, Q_VOCAB, dtype=jnp.int32)

    sims = deep_dssm_forward(qs, ds, params)
    sims = jax.block_until_ready(sims)

    ref = reference_forward(qs, ds, params)
    assert sims.shape == (B,)
    max_err = float(jnp.max(jnp.abs(sims - ref)))
    assert max_err < 1e-4, (max_err, sims, ref)

    print("KERNEL_OK")
</pallas_src>

<mosaic_0001>
module attributes {stable_mosaic.version = 11 : i64} {
  func.func @dssm_kernel(%arg0: i32, %arg1: memref<8x10x8xf32, #tpu.memory_space<vmem>>, %arg2: memref<8x10x8xf32, #tpu.memory_space<vmem>>, %arg3: memref<24x300xf32, #tpu.memory_space<vmem>>, %arg4: memref<1x300xf32, #tpu.memory_space<vmem>>, %arg5: memref<24x300xf32, #tpu.memory_space<vmem>>, %arg6: memref<1x300xf32, #tpu.memory_space<vmem>>, %arg7: memref<300x64xf32, #tpu.memory_space<vmem>>, %arg8: memref<1x64xf32, #tpu.memory_space<vmem>>, %arg9: memref<300x64xf32, #tpu.memory_space<vmem>>, %arg10: memref<1x64xf32, #tpu.memory_space<vmem>>, %arg11: memref<8x128xf32, #tpu.memory_space<vmem>>) attributes {dimension_semantics = [#tpu.dimension_semantics<parallel>], iteration_bounds = array<i64: 2>, scalar_prefetch = 0 : i64, scratch_operands = 0 : i64, tpu.core_type = #tpu.core_type<tc>, window_params = [{transform_indices = @transform_0, window_bounds = array<i64: 8, 10, 8>}, {transform_indices = @transform_1, window_bounds = array<i64: 8, 10, 8>}, {pipeline_mode = #tpu.pipeline_mode<synchronous>, transform_indices = @transform_2, window_bounds = array<i64: 24, 300>}, {pipeline_mode = #tpu.pipeline_mode<synchronous>, transform_indices = @transform_3, window_bounds = array<i64: 1, 300>}, {pipeline_mode = #tpu.pipeline_mode<synchronous>, transform_indices = @transform_4, window_bounds = array<i64: 24, 300>}, {pipeline_mode = #tpu.pipeline_mode<synchronous>, transform_indices = @transform_5, window_bounds = array<i64: 1, 300>}, {pipeline_mode = #tpu.pipeline_mode<synchronous>, transform_indices = @transform_6, window_bounds = array<i64: 300, 64>}, {pipeline_mode = #tpu.pipeline_mode<synchronous>, transform_indices = @transform_7, window_bounds = array<i64: 1, 64>}, {pipeline_mode = #tpu.pipeline_mode<synchronous>, transform_indices = @transform_8, window_bounds = array<i64: 300, 64>}, {pipeline_mode = #tpu.pipeline_mode<synchronous>, transform_indices = @transform_9, window_bounds = array<i64: 1, 64>}, {transform_indices = @transform_10, window_bounds = array<i64: 8, 128>}]} {
    %c0 = arith.constant 0 : index
    %c0_0 = arith.constant 0 : index
    %c0_1 = arith.constant 0 : index
    %0 = vector.load %arg1[%c0, %c0_0, %c0_1] : memref<8x10x8xf32, #tpu.memory_space<vmem>>, vector<8x10x8xf32>
    %c0_2 = arith.constant 0 : index
    %c0_3 = arith.constant 0 : index
    %c0_4 = arith.constant 0 : index
    %1 = vector.load %arg2[%c0_2, %c0_3, %c0_4] : memref<8x10x8xf32, #tpu.memory_space<vmem>>, vector<8x10x8xf32>
    %c0_5 = arith.constant 0 : index
    %c0_6 = arith.constant 0 : index
    %2 = vector.load %arg3[%c0_5, %c0_6] : memref<24x300xf32, #tpu.memory_space<vmem>>, vector<24x300xf32>
    %c0_7 = arith.constant 0 : index
    %c0_8 = arith.constant 0 : index
    %3 = vector.load %arg4[%c0_7, %c0_8] : memref<1x300xf32, #tpu.memory_space<vmem>>, vector<1x300xf32>
    %4 = vector.extract_strided_slice %0 {offsets = [0, 0, 0], sizes = [8, 8, 8], strides = [1, 1, 1]} : vector<8x10x8xf32> to vector<8x8x8xf32>
    %5 = vector.shape_cast %4 : vector<8x8x8xf32> to vector<64x8xf32>
    %6 = vector.extract_strided_slice %2 {offsets = [0, 0], sizes = [8, 300], strides = [1, 1]} : vector<24x300xf32> to vector<8x300xf32>
    %cst = arith.constant dense<0.000000e+00> : vector<64x300xf32>
    %7 = tpu.matmul %5, %6, %cst {dimension_numbers = #tpu.dot_dimension_numbers<[1], [0], [0], [1], [0, 0, 1, 1], [], []>} : vector<64x8xf32>, vector<8x300xf32>, vector<64x300xf32> -> vector<64x300xf32>
    %8 = vector.extract_strided_slice %0 {offsets = [0, 1, 0], sizes = [8, 8, 8], strides = [1, 1, 1]} : vector<8x10x8xf32> to vector<8x8x8xf32>
    %9 = vector.shape_cast %8 : vector<8x8x8xf32> to vector<64x8xf32>
    %10 = vector.extract_strided_slice %2 {offsets = [8, 0], sizes = [8, 300], strides = [1, 1]} : vector<24x300xf32> to vector<8x300xf32>
    %cst_9 = arith.constant dense<0.000000e+00> : vector<64x300xf32>
    %11 = tpu.matmul %9, %10, %cst_9 {dimension_numbers = #tpu.dot_dimension_numbers<[1], [0], [0], [1], [0, 0, 1, 1], [], []>} : vector<64x8xf32>, vector<8x300xf32>, vector<64x300xf32> -> vector<64x300xf32>
    %12 = arith.addf %7, %11 : vector<64x300xf32>
    %13 = vector.extract_strided_slice %0 {offsets = [0, 2, 0], sizes = [8, 8, 8], strides = [1, 1, 1]} : vector<8x10x8xf32> to vector<8x8x8xf32>
    %14 = vector.shape_cast %13 : vector<8x8x8xf32> to vector<64x8xf32>
    %15 = vector.extract_strided_slice %2 {offsets = [16, 0], sizes = [8, 300], strides = [1, 1]} : vector<24x300xf32> to vector<8x300xf32>
    %cst_10 = arith.constant dense<0.000000e+00> : vector<64x300xf32>
    %16 = tpu.matmul %14, %15, %cst_10 {dimension_numbers = #tpu.dot_dimension_numbers<[1], [0], [0], [1], [0, 0, 1, 1], [], []>} : vector<64x8xf32>, vector<8x300xf32>, vector<64x300xf32> -> vector<64x300xf32>
    %17 = arith.addf %12, %16 : vector<64x300xf32>
    %18 = vector.broadcast %3 : vector<1x300xf32> to vector<64x300xf32>
    %19 = arith.addf %17, %18 : vector<64x300xf32>
    %20 = math.tanh %19 : vector<64x300xf32>
    %21 = vector.shape_cast %20 : vector<64x300xf32> to vector<8x8x300xf32>
    %cst_11 = arith.constant dense<0xFF800000> : vector<8x300xf32>
    %22 = vector.multi_reduction <maximumf>, %21, %cst_11 [1] : vector<8x8x300xf32> to vector<8x300xf32>
    %c0_12 = arith.constant 0 : index
    %c0_13 = arith.constant 0 : index
    %23 = vector.load %arg5[%c0_12, %c0_13] : memref<24x300xf32, #tpu.memory_space<vmem>>, vector<24x300xf32>
    %c0_14 = arith.constant 0 : index
    %c0_15 = arith.constant 0 : index
    %24 = vector.load %arg6[%c0_14, %c0_15] : memref<1x300xf32, #tpu.memory_space<vmem>>, vector<1x300xf32>
    %25 = vector.extract_strided_slice %1 {offsets = [0, 0, 0], sizes = [8, 8, 8], strides = [1, 1, 1]} : vector<8x10x8xf32> to vector<8x8x8xf32>
    %26 = vector.shape_cast %25 : vector<8x8x8xf32> to vector<64x8xf32>
    %27 = vector.extract_strided_slice %23 {offsets = [0, 0], sizes = [8, 300], strides = [1, 1]} : vector<24x300xf32> to vector<8x300xf32>
    %cst_16 = arith.constant dense<0.000000e+00> : vector<64x300xf32>
    %28 = tpu.matmul %26, %27, %cst_16 {dimension_numbers = #tpu.dot_dimension_numbers<[1], [0], [0], [1], [0, 0, 1, 1], [], []>} : vector<64x8xf32>, vector<8x300xf32>, vector<64x300xf32> -> vector<64x300xf32>
    %29 = vector.extract_strided_slice %1 {offsets = [0, 1, 0], sizes = [8, 8, 8], strides = [1, 1, 1]} : vector<8x10x8xf32> to vector<8x8x8xf32>
    %30 = vector.shape_cast %29 : vector<8x8x8xf32> to vector<64x8xf32>
    %31 = vector.extract_strided_slice %23 {offsets = [8, 0], sizes = [8, 300], strides = [1, 1]} : vector<24x300xf32> to vector<8x300xf32>
    %cst_17 = arith.constant dense<0.000000e+00> : vector<64x300xf32>
    %32 = tpu.matmul %30, %31, %cst_17 {dimension_numbers = #tpu.dot_dimension_numbers<[1], [0], [0], [1], [0, 0, 1, 1], [], []>} : vector<64x8xf32>, vector<8x300xf32>, vector<64x300xf32> -> vector<64x300xf32>
    %33 = arith.addf %28, %32 : vector<64x300xf32>
    %34 = vector.extract_strided_slice %1 {offsets = [0, 2, 0], sizes = [8, 8, 8], strides = [1, 1, 1]} : vector<8x10x8xf32> to vector<8x8x8xf32>
    %35 = vector.shape_cast %34 : vector<8x8x8xf32> to vector<64x8xf32>
    %36 = vector.extract_strided_slice %23 {offsets = [16, 0], sizes = [8, 300], strides = [1, 1]} : vector<24x300xf32> to vector<8x300xf32>
    %cst_18 = arith.constant dense<0.000000e+00> : vector<64x300xf32>
    %37 = tpu.matmul %35, %36, %cst_18 {dimension_numbers = #tpu.dot_dimension_numbers<[1], [0], [0], [1], [0, 0, 1, 1], [], []>} : vector<64x8xf32>, vector<8x300xf32>, vector<64x300xf32> -> vector<64x300xf32>
    %38 = arith.addf %33, %37 : vector<64x300xf32>
    %39 = vector.broadcast %24 : vector<1x300xf32> to vector<64x300xf32>
    %40 = arith.addf %38, %39 : vector<64x300xf32>
    %41 = math.tanh %40 : vector<64x300xf32>
    %42 = vector.shape_cast %41 : vector<64x300xf32> to vector<8x8x300xf32>
    %cst_19 = arith.constant dense<0xFF800000> : vector<8x300xf32>
    %43 = vector.multi_reduction <maximumf>, %42, %cst_19 [1] : vector<8x8x300xf32> to vector<8x300xf32>
    %c0_20 = arith.constant 0 : index
    %c0_21 = arith.constant 0 : index
    %44 = vector.load %arg7[%c0_20, %c0_21] : memref<300x64xf32, #tpu.memory_space<vmem>>, vector<300x64xf32>
    %cst_22 = arith.constant dense<0.000000e+00> : vector<8x64xf32>
    %45 = tpu.matmul %22, %44, %cst_22 {dimension_numbers = #tpu.dot_dimension_numbers<[1], [0], [0], [1], [0, 0, 1, 1], [], []>} : vector<8x300xf32>, vector<300x64xf32>, vector<8x64xf32> -> vector<8x64xf32>
    %c0_23 = arith.constant 0 : index
    %c0_24 = arith.constant 0 : index
    %46 = vector.load %arg8[%c0_23, %c0_24] : memref<1x64xf32, #tpu.memory_space<vmem>>, vector<1x64xf32>
    %47 = vector.broadcast %46 : vector<1x64xf32> to vector<8x64xf32>
    %48 = arith.addf %45, %47 : vector<8x64xf32>
    %c0_25 = arith.constant 0 : index
    %c0_26 = arith.constant 0 : index
    %49 = vector.load %arg9[%c0_25, %c0_26] : memref<300x64xf32, #tpu.memory_space<vmem>>, vector<300x64xf32>
    %cst_27 = arith.constant dense<0.000000e+00> : vector<8x64xf32>
    %50 = tpu.matmul %43, %49, %cst_27 {dimension_numbers = #tpu.dot_dimension_numbers<[1], [0], [0], [1], [0, 0, 1, 1], [], []>} : vector<8x300xf32>, vector<300x64xf32>, vector<8x64xf32> -> vector<8x64xf32>
    %c0_28 = arith.constant 0 : index
    %c0_29 = arith.constant 0 : index
    %51 = vector.load %arg10[%c0_28, %c0_29] : memref<1x64xf32, #tpu.memory_space<vmem>>, vector<1x64xf32>
    %52 = vector.broadcast %51 : vector<1x64xf32> to vector<8x64xf32>
    %53 = arith.addf %50, %52 : vector<8x64xf32>
    %54 = arith.mulf %48, %53 : vector<8x64xf32>
    %cst_30 = arith.constant dense<0.000000e+00> : vector<8xf32>
    %55 = vector.multi_reduction <add>, %54, %cst_30 [1] : vector<8x64xf32> to vector<8xf32>
    %56 = vector.shape_cast %55 : vector<8xf32> to vector<8x1xf32>
    %57 = arith.mulf %48, %48 : vector<8x64xf32>
    %cst_31 = arith.constant dense<0.000000e+00> : vector<8xf32>
    %58 = vector.multi_reduction <add>, %57, %cst_31 [1] : vector<8x64xf32> to vector<8xf32>
    %59 = vector.shape_cast %58 : vector<8xf32> to vector<8x1xf32>
    %60 = arith.mulf %53, %53 : vector<8x64xf32>
    %cst_32 = arith.constant dense<0.000000e+00> : vector<8xf32>
    %61 = vector.multi_reduction <add>, %60, %cst_32 [1] : vector<8x64xf32> to vector<8xf32>
    %62 = vector.shape_cast %61 : vector<8xf32> to vector<8x1xf32>
    %cst_33 = arith.constant 1.000000e-24 : f32
    %63 = vector.broadcast %cst_33 : f32 to vector<8x1xf32>
    %64 = arith.maximumf %59, %63 : vector<8x1xf32>
    %65 = math.rsqrt %64 : vector<8x1xf32>
    %66 = arith.mulf %56, %65 : vector<8x1xf32>
    %cst_34 = arith.constant 1.000000e-24 : f32
    %67 = vector.broadcast %cst_34 : f32 to vector<8x1xf32>
    %68 = arith.maximumf %62, %67 : vector<8x1xf32>
    %69 = math.rsqrt %68 : vector<8x1xf32>
    %70 = arith.mulf %66, %69 : vector<8x1xf32>
    %71 = vector.shape_cast %70 : vector<8x1xf32> to vector<8x1xf32>
    %72 = vector.broadcast %71 : vector<8x1xf32> to vector<8x128xf32>
    %c0_35 = arith.constant 0 : index
    %c0_36 = arith.constant 0 : index
    %73 = vector.load %arg11[%c0_35, %c0_36] : memref<8x128xf32, #tpu.memory_space<vmem>>, vector<8x128xf32>
    tpu.vector_store %arg11[%c0_35, %c0_36], %72 {strides = array<i32>} : memref<8x128xf32, #tpu.memory_space<vmem>>, vector<8x128xf32>,
    return
  }
  func.func @transform_0(%arg0: i32) -> (i32, i32, i32) {
    %c0_i32 = arith.constant 0 : i32
    %c0_i32_0 = arith.constant 0 : i32
    %c0_i32_1 = arith.constant 0 : i32
    return %arg0, %c0_i32, %c0_i32_0 : i32, i32, i32
  }
  func.func @transform_1(%arg0: i32) -> (i32, i32, i32) {
    %c0_i32 = arith.constant 0 : i32
    %c0_i32_0 = arith.constant 0 : i32
    %c0_i32_1 = arith.constant 0 : i32
    return %arg0, %c0_i32, %c0_i32_0 : i32, i32, i32
  }
  func.func @transform_2(%arg0: i32) -> (i32, i32) {
    %c0_i32 = arith.constant 0 : i32
    %c0_i32_0 = arith.constant 0 : i32
    %c0_i32_1 = arith.constant 0 : i32
    return %c0_i32, %c0_i32_0 : i32, i32
  }
  func.func @transform_3(%arg0: i32) -> (i32, i32) {
    %c0_i32 = arith.constant 0 : i32
    %c0_i32_0 = arith.constant 0 : i32
    %c0_i32_1 = arith.constant 0 : i32
    return %c0_i32, %c0_i32_0 : i32, i32
  }
  func.func @transform_4(%arg0: i32) -> (i32, i32) {
    %c0_i32 = arith.constant 0 : i32
    %c0_i32_0 = arith.constant 0 : i32
    %c0_i32_1 = arith.constant 0 : i32
    return %c0_i32, %c0_i32_0 : i32, i32
  }
  func.func @transform_5(%arg0: i32) -> (i32, i32) {
    %c0_i32 = arith.constant 0 : i32
    %c0_i32_0 = arith.constant 0 : i32
    %c0_i32_1 = arith.constant 0 : i32
    return %c0_i32, %c0_i32_0 : i32, i32
  }
  func.func @transform_6(%arg0: i32) -> (i32, i32) {
    %c0_i32 = arith.constant 0 : i32
    %c0_i32_0 = arith.constant 0 : i32
    %c0_i32_1 = arith.constant 0 : i32
    return %c0_i32, %c0_i32_0 : i32, i32
  }
  func.func @transform_7(%arg0: i32) -> (i32, i32) {
    %c0_i32 = arith.constant 0 : i32
    %c0_i32_0 = arith.constant 0 : i32
    %c0_i32_1 = arith.constant 0 : i32
    return %c0_i32, %c0_i32_0 : i32, i32
  }
  func.func @transform_8(%arg0: i32) -> (i32, i32) {
    %c0_i32 = arith.constant 0 : i32
    %c0_i32_0 = arith.constant 0 : i32
    %c0_i32_1 = arith.constant 0 : i32
    return %c0_i32, %c0_i32_0 : i32, i32
  }
  func.func @transform_9(%arg0: i32) -> (i32, i32) {
    %c0_i32 = arith.constant 0 : i32
    %c0_i32_0 = arith.constant 0 : i32
    %c0_i32_1 = arith.constant 0 : i32
    return %c0_i32, %c0_i32_0 : i32, i32
  }
  func.func @transform_10(%arg0: i32) -> (i32, i32) {
    %c0_i32 = arith.constant 0 : i32
    %c0_i32_0 = arith.constant 0 : i32
    return %arg0, %c0_i32 : i32, i32
  }
}

</mosaic_0001>

<bundles_post_ra>
// kernel: tpu_custom_call.1
= control target key start
LH: loop header
LB: loop body
LE: loop exit
PB: predicated region body
PF: predicated region fallthrough
CT: control target
= control target key end

     0   :  { %15 = vsyncpa [#allocation3], 0  ;;  %s5059_s0 = inlined_call_operand.vmem [shape: f32[16,10,8], index: 0, kind: input, shape index: {}]   ;;  %s5060_s1 = inlined_call_operand.vmem [shape: f32[16,10,8], index: 1, kind: input, shape index: {}]   ;;  %s5061_s2 = inlined_call_operand.vmem [shape: f32[24,300], index: 2, kind: input, shape index: {}]   ;;  %s5062_s3 = inlined_call_operand.vmem [shape: f32[1,300], index: 3, kind: input, shape index: {}]   ;;  %s5063_s4 = inlined_call_operand.vmem [shape: f32[24,300], index: 4, kind: input, shape index: {}]   ;;  %s5064_s5 = inlined_call_operand.vmem [shape: f32[1,300], index: 5, kind: input, shape index: {}]   ;;  %s5065_s6 = inlined_call_operand.vmem [shape: f32[300,64], index: 6, kind: input, shape index: {}]   ;;  %s5066_s7 = inlined_call_operand.vmem [shape: f32[1,64], index: 7, kind: input, shape index: {}]   ;;  %s5067_s8 = inlined_call_operand.vmem [shape: f32[300,64], index: 8, kind: input, shape index: {}]   ;;  %s5068_s9 = inlined_call_operand.vmem [shape: f32[1,64], index: 9, kind: input, shape index: {}]   ;;  %s5069_s10 = inlined_call_operand.hbm [shape: f32[16,128], index: 10, kind: output, shape index: {}]  }
   0x1   :  { %17 = vsyncpa [#allocation3 + $0x1], 0  ;;  %s3861_s13 = smov 0   ;;  %s3863_s14 = smov 0  }
   0x2   :  { %s3865_s15 = smov 0   ;;  %s3867_s16 = smov 0  }
   0x3 LB: > { %s3882_s17 = sadd.s32 4294967295, %s3799_s16   ;;  %s3043_s18 = sadd.s32 4294967294, %s3799_s16   ;;  %s3799_s16 = sphi %s3867_s16, %s5096_s16   ;;  %s3795_s15 = sphi %s3865_s15, %s5095_s15   ;;  %s3791_s14 = sphi %s3863_s14, %s5094_s14   ;;  %s3787_s13 = sphi %s3861_s13, %s5093_s13  }
   0x4   : > { %s3886_s19 = sadd.s32 1, %s3799_s16   ;;  %s250_s20 = sadd.s32 1, %s3795_s15 }
   0x5   : > { %s247_s21 = ssub.s32 %s3799_s16, %s3886_s19  ;;  %p260_p0 = scmp.ne.s32.totalorder %s3795_s15, %s3791_s14 }
   0x6   : > { %p248_p1 = scmp.eq.s32.totalorder %s247_s21, 0  ;;  %p261_p2 = scmp.eq.s32.totalorder %s3882_s17, 1 }
   0x7   : > { %p266_p3 = scmp.ne.s32.totalorder %s3791_s14, %s3787_s13  ;;  %p267_p4 = scmp.eq.s32.totalorder %s3043_s18, 1 }
   0x8   : > { %s3897_s22 = scalar_select %p248_p1, %s3795_s15, %s250_s20  }
   0x9   : > { %p3899_p5 = por %p261_p2, %p260_p0  ;;  %p3903_p6 = por %p267_p4, %p266_p3 }
   0xa   : > { %p3046_p7 = scmp.ge.s32.totalorder %s3799_s16, 1  ;;  %p329_p8 = scmp.lt.s32.totalorder %s3799_s16, 3 }
   0xc   : > { %p330_p9 = pnand %p3046_p7, %p329_p8 }
   0xd   : > { %v422_v0 = vld [vmem:[%s5061_s2 + $0x10] sm:$0xff] (!%p330_p9)  ;;  %s3048_s27 = sshll.u32 (!%p330_p9), %s3882_s17, 3  ;;  %v428_v1 = vld [vmem:[%s5061_s2 + $0x40] sm:$0xff] (!%p330_p9)  ;;  %v423_v3 = vld [vmem:[%s5061_s2 + $0x18] sm:$0xff] (!%p330_p9)  ;;  %v5070_v5 = vmov (!%p330_p9), 0.0   ;;  %vm471_vm0 = vcmask (!%p330_p9), 64512  }
   0xe   : > { %333 = sbr.rel (%p330_p9) target bundleno = 835 (0x343), region = 60  ;;  %v424_v2 = vld [vmem:[%s5061_s2 + $0x20] sm:$0xff] (!%p330_p9)  ;;  %3314 = vmatprep.subr.mxu1 (!%p330_p9), %v422_v0  ;;  %p375_p10 = scmp.lt.s32.totalorder (!%p330_p9), %s3048_s27, 15  ;;  %v425_v4 = vld [vmem:[%s5061_s2 + $0x28] sm:$0xff] (!%p330_p9)  ;;  %552 = vmatprep.mubr.f32.mxu0 (!%p330_p9), %v5070_v5  ;;  %vm446_vm1 = vcmask (!%p330_p9), 1046528   ;;  %vm940_vm2 = vcmask (!%p330_p9), 1045504  }
   0xf   : > { %488 = vmatprep.subr.mxu0 (!%p330_p9), %v424_v2  ;;  %3315 = vmatpush3.msra.mxu1 (!%p330_p9), %v422_v0  ;;  %v1444_v11 = vld [vmem:[%s5063_s4 + $0x20] sm:$0xff] (!%p330_p9)  ;;  %v421_v20 = vld [vmem:[%s5061_s2 + $0x8] sm:$0xff] (!%p330_p9)  ;;  %v1443_v54 = vld [vmem:[%s5063_s4 + $0x18] sm:$0xff] (!%p330_p9)  ;;  %vm1299_vm3 = vcmask (!%p330_p9), 359424   ;;  %vm2525_vm4 = vcmask (!%p330_p9), 1041409   ;;  %vm2527_vm5 = vcmask (!%p330_p9), 1042434  }
  0x10   : > { %489 = vmatpush1.msra.mxu0 (!%p330_p9), %v423_v3  ;;  %3328 = vmatprep.subr.mxu1 (!%p330_p9), %v428_v1  ;;  %v4049_v56 = vld [vmem:[%s5063_s4 + $0x28] sm:$0xff] (!%p330_p9)  ;;  %vm2529_vm6 = vcmask (!%p330_p9), 1043459   ;;  %vm2531_vm7 = vcmask (!%p330_p9), 1044484   ;;  %vm2533_vm8 = vcmask (!%p330_p9), 1045509   ;;  %vm2535_vm9 = vcmask (!%p330_p9), 1046534   ;;  %s371_s12 = sand.u32 (!%p330_p9), 1, %s3791_s14  }
  0x11   : > { %3300 = vmatprep.subr.mxu0 (!%p330_p9), %v425_v4  ;;  %vm2537_vm10 = vcmask (!%p330_p9), 1047559   ;;  %vm2557_vm11 = vcmask (!%p330_p9), 1043456   ;;  %vm3803_vm12 = vmmov (!%p330_p9), 0   ;;  %vm3804_vm13 = vmmov (!%p330_p9), 1   ;;  %s3047_s18 = sshll.u32 (!%p330_p9), %s371_s12, 3  ;;  %s3157_s20 = sshll.u32 (!%p330_p9), %s3882_s17, 7 }
  0x12   : > { %vm4839_vm14 = vmpackc.low (!%p330_p9), %vm2557_vm11, %vm3804_vm13  ;;  %vm2939_vm15 = vcmask (!%p330_p9), 523264   ;;  %s373_s21 = scalar_lea.vmem (!%p330_p9), [#allocation2], %s3047_s18  ;;  %s5017_s28 = scalar_lea.hbm (!%p330_p9), %s5069_s10, %s3157_s20 }
  0x13   : > { %s2959_s30 = scalar_lea.sflag (!%p330_p9), [#allocation3], %s371_s12  ;;  %s3805_s17 = smov (!%p330_p9), [#allocation2]  }
  0x14   : > { %s3741_s11 = sshll.u32 (!%p330_p9), %s3805_s17, 4  ;;  %s3742_s11 = int_to_ptr.vmem [resolvable:$false] %s3741_s11 }
  0x15   : > { %s5098_s27 = smov (!%p375_p10, %s3048_s27), 15  ;;  %s3743_s18 = scalar_lea.vmem %s3742_s11, 256 }
  0x16   : > { %s3160_s25 = sshll.u32 %s5098_s27, 4 }
  0x17   : > { %s3934_s29 = scalar_lea.vmem %s5059_s0, %s3160_s25  ;;  %s4017_s26 = scalar_lea.vmem %s5060_s1, %s3160_s25 }
  0x18   : > { %v3937_v6 = vld [vmem:[%s3934_s29] sm:$0xff]  ;;  %v3940_v7 = vld [vmem:[%s3934_s29 + $0x10] sm:$0xff]  ;;  %v389_v8 = vld [vmem:[%s3934_s29 + $0x8] sm:$0x3] }
  0x19   : > { %v447_v9 = vrot.slane %v3937_v6, 1  ;;  %3316 = vmatprep.mubr.msk.f32.mxu1 %vm471_vm0, %v3937_v6  ;;  %v3947_v10 = vld [vmem:[%s3934_s29 + $0x20] sm:$0xff]  ;;  %v450_v12 = vrot.slane %v3940_v7, 1  ;;  %v448_v13 = vrot.slane %v389_v8, 1  ;;  %v391_v14 = vld [vmem:[%s3934_s29 + $0x18] sm:$0x3] }
  0x1a   : > { %3317 = vmatmul.mubr.msk.f32.vlgmr.msra.gmra.mrb[0].mxu1 %vm471_vm0, %v3940_v7  ;;  %v3959_v15 = vld [vmem:[%s3934_s29 + $0x30] sm:$0xff]  ;;  %v451_v16 = vrot.slane %v391_v14, 1  ;;  %v3965_v18 = vld [vmem:[%s3934_s29 + $0x40] sm:$0xff]  ;;  %v393_v19 = vld [vmem:[%s3934_s29 + $0x28] sm:$0x3]  ;;  %v453_v21 = vrot.slane %v3947_v10, 1 }
  0x1b   : > { %3329 = vmatpush3.msra.mxu1 %v428_v1  ;;  %3319 = vmatprep.mubr.msk.f32.mxu1 %vm471_vm0, %v3947_v10  ;;  %v3962_v17 = vsel %vm446_vm1, %v447_v9, %v448_v13  ;;  %v454_v23 = vrot.slane %v393_v19, 1  ;;  %v3983_v24 = vld [vmem:[%s3934_s29 + $0x50] sm:$0xff]  ;;  %v395_v25 = vld [vmem:[%s3934_s29 + $0x38] sm:$0x3]  ;;  %v941_v26 = vrot.slane %v3937_v6, 2  ;;  %v3988_v27 = vld [vmem:[%s3934_s29 + $0x60] sm:$0xff] }
  0x1c   : > { %1506 = vmatprep.subr.mxu1 %v1444_v11  ;;  %3054 = vmatmul.mubr.msk.f32.vlgmr.msra.gmra.mrb[0].mxu0 %vm471_vm0, %v3962_v17  ;;  %v3978_v22 = vsel %vm446_vm1, %v450_v12, %v451_v16  ;;  %v942_v28 = vrot.slane %v389_v8, 2  ;;  %v456_v29 = vrot.slane %v3959_v15, 1  ;;  %v457_v31 = vrot.slane %v395_v25, 1  ;;  %v397_v32 = vld [vmem:[%s3934_s29 + $0x48] sm:$0x3]  ;;  %v4004_v35 = vld [vmem:[%s3934_s29 + $0x70] sm:$0xff] }
  0x1d   : > { %558 = vmatprep.mubr.f32.mxu0 %v5070_v5  ;;  %3301 = vmatpush3.msra.mxu0 %v425_v4  ;;  %v3997_v30 = vsel %vm446_vm1, %v453_v21, %v454_v23  ;;  %v944_v33 = vrot.slane %v3940_v7, 2  ;;  %v945_v34 = vrot.slane %v391_v14, 2  ;;  %v399_v36 = vld [vmem:[%s3934_s29 + $0x58] sm:$0x3]  ;;  %v947_v37 = vrot.slane %v3947_v10, 2  ;;  %v4052_v57 = vld [vmem:[%s4017_s26] sm:$0xff] }
  0x1e   : > { %3320 = vmatmul.mubr.msk.f32.gmra.mrb[2].mxu1 %vm471_vm0, %v3959_v15  ;;  %722 = vmatprep.subr.mxu0 %v421_v20  ;;  %v950_v38 = vrot.slane %v3959_v15, 2  ;;  %v4010_v39 = vsel %vm940_vm2, %v941_v26, %v942_v28  ;;  %v948_v40 = vrot.slane %v393_v19, 2  ;;  %v459_v41 = vrot.slane %v3965_v18, 1  ;;  %v4037_v52 = vld [vmem:[%s3934_s29 + $0x68] sm:$0x3]  ;;  %v4084_v4 = vld [vmem:[%s4017_s26 + $0x10] sm:$0xff] }
  0x1f   : > { %3322 = vmatprep.mubr.msk.f32.mxu1 %vm471_vm0, %v3965_v18  ;;  %v953_v42 = vrot.slane %v3965_v18, 2  ;;  %v460_v43 = vrot.slane %v397_v32, 1  ;;  %v951_v44 = vrot.slane %v395_v25, 2  ;;  %v462_v45 = vrot.slane %v3983_v24, 1  ;;  %v4065_v62 = vld [vmem:[%s4017_s26 + $0x8] sm:$0x3] }
  0x20   : > { %3055 = vmatmul.mubr.msk.f32.gmra.mrb[2].mxu0 %vm471_vm0, %v3978_v22  ;;  %v4028_v46 = vsel %vm446_vm1, %v456_v29, %v457_v31  ;;  %v463_v47 = vrot.slane %v399_v36, 1  ;;  %v954_v48 = vrot.slane %v397_v32, 2  ;;  %v956_v49 = vrot.slane %v3983_v24, 2  ;;  %v4068_v63 = vld [vmem:[%s4017_s26 + $0x18] sm:$0x3]  ;;  %v4087_v8 = vld [vmem:[%s4017_s26 + $0x20] sm:$0xff] }
  0x21   : > { %564 = vmatprep.mubr.f32.mxu0 %v5070_v5  ;;  %v4034_v50 = vsel %vm940_vm2, %v944_v33, %v945_v34  ;;  %v957_v51 = vrot.slane %v399_v36, 2  ;;  %v465_v53 = vrot.slane %v3988_v27, 1  ;;  %v4044_v55 = vsel %vm940_vm2, %v947_v37, %v948_v40  ;;  %v4081_v3 = vld [vmem:[%s3934_s29 + $0x78] sm:$0x3]  ;;  %v4090_v9 = vld [vmem:[%s4017_s26 + $0x28] sm:$0x3] }
  0x22   : > { %3323 = vmatmul.mubr.msk.f32.gmra.mrb[4].mxu1 %vm471_vm0, %v3983_v24  ;;  %v959_v58 = vrot.slane %v3988_v27, 2  ;;  %v962_v59 = vrot.slane %v4004_v35, 2  ;;  %v4059_v60 = vsel %vm446_vm1, %v459_v41, %v460_v43  ;;  %v4062_v61 = vsel %vm940_vm2, %v950_v38, %v951_v44  ;;  %v4099_v13 = vld [vmem:[%s4017_s26 + $0x30] sm:$0xff]  ;;  %v4102_v14 = vld [vmem:[%s4017_s26 + $0x38] sm:$0x3]  ;;  %v4110_v23 = vld [vmem:[%s4017_s26 + $0x40] sm:$0xff] }
  0x23   : > { %3325 = vmatprep.mubr.msk.f32.mxu1 %vm471_vm0, %v3988_v27  ;;  %v4074_v0 = vsel %vm446_vm1, %v462_v45, %v463_v47  ;;  %v4077_v1 = vsel %vm940_vm2, %v953_v42, %v954_v48  ;;  %v466_v2 = vrot.slane %v4037_v52, 1  ;;  %v1958_v11 = vrot.slane %v4052_v57, 2  ;;  %v4113_v25 = vld [vmem:[%s4017_s26 + $0x50] sm:$0xff]  ;;  %v4121_v31 = vld [vmem:[%s4017_s26 + $0x48] sm:$0x3]  ;;  %v4138_v38 = vld [vmem:[%s4017_s26 + $0x60] sm:$0xff] }
  0x24   : > { %3056 = vmatmul.mubr.msk.f32.gmra.mrb[4].mxu0 %vm471_vm0, %v3997_v30  ;;  %v4096_v12 = vsel %vm940_vm2, %v956_v49, %v957_v51  ;;  %v1959_v16 = vrot.slane %v4065_v62, 2  ;;  %v1961_v19 = vrot.slane %v4084_v4, 2  ;;  %v1962_v20 = vrot.slane %v4068_v63, 2  ;;  %v4124_v32 = vld [vmem:[%s4017_s26 + $0x58] sm:$0x3] }
  0x25   : > { %570 = vmatprep.mubr.f32.mxu0 %v5070_v5  ;;  %v960_v21 = vrot.slane %v4037_v52, 2  ;;  %v1964_v26 = vrot.slane %v4087_v8, 2  ;;  %v1965_v28 = vrot.slane %v4090_v9, 2  ;;  %v1967_v29 = vrot.slane %v4099_v13, 2  ;;  %v4141_v40 = vld [vmem:[%s4017_s26 + $0x68] sm:$0x3] }
  0x26   : > { %3326 = vmatmul.mubr.msk.f32.gmra.mrb[6].mxu1 %vm471_vm0, %v4004_v35  ;;  %v4127_v33 = vsel %vm940_vm2, %v1958_v11, %v1959_v16  ;;  %v4130_v34 = vsel %vm940_vm2, %v1961_v19, %v1962_v20  ;;  %v1968_v36 = vrot.slane %v4102_v14, 2  ;;  %v1970_v37 = vrot.slane %v4110_v23, 2 }
  0x27   : > { %3330 = vmatprep.mubr.msk.f32.mxu1 %vm471_vm0, %v4010_v39  ;;  %v4144_v41 = vsel %vm940_vm2, %v1964_v26, %v1965_v28  ;;  %v1971_v42 = vrot.slane %v4121_v31, 2  ;;  %v1973_v43 = vrot.slane %v4113_v25, 2  ;;  %v1974_v44 = vrot.slane %v4124_v32, 2  ;;  %v4184_v26 = vld [vmem:[%s4017_s26 + $0x78] sm:$0x3] }
  0x28   : > { %3057 = vmatmul.mubr.msk.f32.gmra.mrb[6].mxu0 %vm471_vm0, %v4028_v46  ;;  %v963_v45 = vrot.slane %v4081_v3, 2  ;;  %v4153_v47 = vsel %vm940_vm2, %v1967_v29, %v1968_v36  ;;  %v1976_v48 = vrot.slane %v4138_v38, 2  ;;  %v1977_v49 = vrot.slane %v4141_v40, 2 }
  0x29   : > { %576 = vmatprep.mubr.f32.mxu0 %v5070_v5  ;;  %v4158_v51 = vsel %vm940_vm2, %v959_v58, %v960_v21  ;;  %v4161_v52 = vsel %vm940_vm2, %v1970_v37, %v1971_v42  ;;  %v468_v16 = vrot.slane %v4004_v35, 1  ;;  %v467_v58 = vsel %vm446_vm1, %v465_v53, %v466_v2  ;;  %v4181_v21 = vld [vmem:[%s4017_s26 + $0x70] sm:$0xff]  ;;  %v1441_v42 = vld [vmem:[%s5063_s4 + $0x8] sm:$0xff]  ;;  %s2972_s26 = sshll.u32 %s373_s21, 4  ;;  %s5019_s26 = int_to_ptr.vmem [resolvable:$true] %s2972_s26 }
  0x2a   : > { %3331 = vmatmul.mubr.msk.f32.vlgmr.msra.gmra.mrb[0].mxu1 %vm471_vm0, %v4034_v50  ;;  %v4169_v11 = vsel %vm940_vm2, %v1976_v48, %v1977_v49  ;;  %v469_v19 = vrot.slane %v4081_v3, 1  ;;  %v1466_v20 = vrot.slane %v4052_v57, 1  ;;  %v4191_v28 = vsel %vm940_vm2, %v962_v59, %v963_v45  ;;  %v420_v45 = vld [vmem:[%s5061_s2] sm:$0xff]  ;;  %s3737_s29 = scalar_lea.vmem %s5019_s26, 128  ;;  %p3744_p0 = scmp.lt.s32.totalorder %s5019_s26, %s3742_s11 }
  0x2b   : > { %1507 = vmatpush1.msra.mxu1 %v1443_v54  ;;  %3333 = vmatprep.mubr.msk.f32.mxu1 %vm471_vm0, %v4044_v55  ;;  %v4164_v54 = vsel %vm940_vm2, %v1973_v43, %v1974_v44  ;;  %v1467_v29 = vrot.slane %v4065_v62, 1  ;;  %v1979_v53 = vrot.slane %v4181_v21, 2  ;;  %v1980_v2 = vrot.slane %v4184_v26, 2  ;;  %p3738_p11 = scmp.ne.s32.totalorder %s5019_s26, %s3737_s29  ;;  %p3745_p1 = scmp.lt.s32.totalorder %s3743_s18, %s3737_s29 }
  0x2c   : > { %3342 = vmatprep.subr.mxu1 %v4049_v56  ;;  %3058 = vmatmul.mubr.msk.f32.gmra.mrb[8].mxu0 %vm471_vm0, %v4059_v60  ;;  %v470_v36 = vsel %vm446_vm1, %v468_v16, %v469_v19  ;;  %v1469_v62 = vrot.slane %v4084_v4, 1  ;;  %v1470_v37 = vrot.slane %v4068_v63, 1  ;;  %v1472_v44 = vrot.slane %v4087_v8, 1 }
  0x2d   : > { %582 = vmatprep.mubr.f32.mxu0 %v5070_v5  ;;  %v4198_v3 = vsel %vm940_vm2, %v1979_v53, %v1980_v2  ;;  %v1468_v59 = vsel %vm446_vm1, %v1466_v20, %v1467_v29  ;;  %v1473_v63 = vrot.slane %v4090_v9, 1  ;;  %v1475_v9 = vrot.slane %v4099_v13, 1  ;;  %v1442_v20 = vld [vmem:[%s5063_s4 + $0x10] sm:$0xff]  ;;  %v2464_v29 = vld [vmem:[%s5065_s6 + $0x40] sm:$0xff]  ;;  %v2465_v53 = vld [vmem:[%s5065_s6 + $0x48] sm:$0xff]  ;;  %p3739_p12 = pnand %p3738_p11, %p3899_p5  ;;  %p3746_p2 = por %p3745_p1, %p3744_p0 }
  0x2e   : > { %3334 = vmatmul.mubr.msk.f32.gmra.mrb[2].mxu1 %vm471_vm0, %v4062_v61  ;;  %v1471_v43 = vsel %vm446_vm1, %v1469_v62, %v1470_v37  ;;  %v1476_v48 = vrot.slane %v4102_v14, 1  ;;  %v1479_v49 = vrot.slane %v4121_v31, 1  ;;  %v1482_v14 = vrot.slane %v4124_v32, 1  ;;  %v2466_v62 = vld [vmem:[%s5065_s6 + $0x50] sm:$0xff]  ;;  %v2467_v37 = vld [vmem:[%s5065_s6 + $0x58] sm:$0xff] }
  0x2f   : > { %3336 = vmatprep.mubr.msk.f32.mxu1 %vm471_vm0, %v4077_v1  ;;  %v1484_v31 = vrot.slane %v4138_v38, 1  ;;  %v1485_v16 = vrot.slane %v4141_v40, 1  ;;  %v1487_v19 = vrot.slane %v4181_v21, 1  ;;  %v1488_v40 = vrot.slane %v4184_v26, 1  ;;  %v2481_v26 = vld [vmem:[%s5065_s6 + $0xc8] sm:$0xff]  ;;  %p3740_p13 = pneg %p3739_p12 }
  0x30   : > { %3059 = vmatmul.mubr.msk.f32.gmra.mrb[10].mxu0 %vm471_vm0, %v4074_v0  ;;  %v3432_v2 = vpack.c.bf16 %v2465_v53, %v2464_v29 }
  0x31   : > { %588 = vmatprep.mubr.f32.mxu0 %v5070_v5  ;;  %v1486_v32 = vsel %vm446_vm1, %v1484_v31, %v1485_v16  ;;  %p3747_p3 = pnand %p3746_p2, %p3740_p13 }
  0x32   : > { %3337 = vmatmul.mubr.msk.f32.gmra.mrb[4].mxu1 %vm471_vm0, %v4096_v12 }
  0x33   : > { %3339 = vmatprep.mubr.msk.f32.mxu1 %vm471_vm0, %v4158_v51 }
  0x34   : > { %3060 = vmatmul.mubr.msk.f32.gmra.mrb[12].mxu0 %vm471_vm0, %v467_v58 }
  0x35   : > { %594 = vmatprep.mubr.f32.mxu0 %v5070_v5 }
  0x36   : > { %3340 = vmatmul.mubr.msk.f32.gmra.mrb[6].mxu1 %vm471_vm0, %v4191_v28 }
  0x37   : > { %1570 = vmatprep.mubr.f32.mxu1 %v5070_v5 }
  0x38   : > { %3061 = vmatmul.mubr.msk.f32.gmra.mrb[14].mxu0 %vm471_vm0, %v470_v36 }
  0x39   : > { %3302 = vmatprep.mubr.msk.f32.mxu0 %vm471_vm0, %v3962_v17  ;;  %v427_v17 = vld [vmem:[%s5061_s2 + $0x38] sm:$0xff] }
  0x3a   : > { %3102 = vmatmul.mubr.msk.f32.vlgmr.msra.gmra.mrb[8].mxu1 %vm471_vm0, %v1468_v59 }
  0x3b   : > { %3343 = vmatpush3.msra.mxu1 %v4049_v56  ;;  %1576 = vmatprep.mubr.f32.mxu1 %v5070_v5  ;;  %v1474_v56 = vsel %vm446_vm1, %v1472_v44, %v1473_v63  ;;  %v2485_v44 = vld [vmem:[%s5065_s6 + $0xe8] sm:$0xff] }
  0x3c   : > { %1740 = vmatprep.subr.mxu1 %v1441_v42  ;;  %3303 = vmatmul.mubr.msk.f32.vlgmr.msra.gmra.mrb[16].mxu0 %vm471_vm0, %v3978_v22  ;;  %v1477_v22 = vsel %vm446_vm1, %v1475_v9, %v1476_v48  ;;  %v3436_v42 = vpack.c.bf16 %v2467_v37, %v2466_v62  ;;  %v2486_v9 = vld [vmem:[%s5065_s6 + $0xf0] sm:$0xff]  ;;  %v2487_v48 = vld [vmem:[%s5065_s6 + $0xf8] sm:$0xff] }
  0x3d   : > { %3305 = vmatprep.mubr.msk.f32.mxu0 %vm471_vm0, %v3997_v30  ;;  %723 = vmatpush1.msra.mxu0 %v420_v45  ;;  %v1478_v30 = vrot.slane %v4110_v23, 1  ;;  %v2468_v45 = vld [vmem:[%s5065_s6 + $0x60] sm:$0xff] }
  0x3e   : > { %3103 = vmatmul.mubr.msk.f32.gmra.mrb[10].mxu1 %vm471_vm0, %v1471_v43  ;;  %981 = vmatprep.subr.mxu0 %v427_v17  ;;  %v2469_v17 = vld [vmem:[%s5065_s6 + $0x68] sm:$0xff] }
  0x3f   : > { %1582 = vmatprep.mubr.f32.mxu1 %v5070_v5 }
  0x40   : > { %3306 = vmatmul.mubr.msk.f32.gmra.mrb[18].mxu0 %vm471_vm0, %v4028_v46  ;;  %v1480_v46 = vsel %vm446_vm1, %v1478_v30, %v1479_v49  ;;  %v2470_v30 = vld [vmem:[%s5065_s6 + $0x70] sm:$0xff]  ;;  %v2471_v49 = vld [vmem:[%s5065_s6 + $0x78] sm:$0xff] }
  0x41   : > { %3308 = vmatprep.mubr.msk.f32.mxu0 %vm471_vm0, %v4059_v60  ;;  %v1481_v60 = vrot.slane %v4113_v25, 1 }
  0x42   : > { %3104 = vmatmul.mubr.msk.f32.gmra.mrb[12].mxu1 %vm471_vm0, %v1474_v56 }
  0x43   : > { %1588 = vmatprep.mubr.f32.mxu1 %v5070_v5 }
  0x44   : > { %3309 = vmatmul.mubr.msk.f32.gmra.mrb[20].mxu0 %vm471_vm0, %v4074_v0  ;;  %v1483_v0 = vsel %vm446_vm1, %v1481_v60, %v1482_v14  ;;  %v5071_v60 = vmov 0.0|0.0  }
  0x45   : > { %3311 = vmatprep.mubr.msk.f32.mxu0 %vm471_vm0, %v467_v58  ;;  %v426_v58 = vld [vmem:[%s5061_s2 + $0x30] sm:$0xff] }
  0x46   : > { %3105 = vmatmul.mubr.msk.f32.gmra.mrb[14].mxu1 %vm471_vm0, %v1477_v22 }
  0x47   : > { %1594 = vmatprep.mubr.f32.mxu1 %v5070_v5 }
  0x48   : > { %3312 = vmatmul.mubr.msk.f32.gmra.mrb[22].mxu0 %vm471_vm0, %v470_v36  ;;  %v2483_v36 = vld [vmem:[%s5065_s6 + $0xd8] sm:$0xff] }
  0x49   : > { %786 = vmatprep.mubr.f32.mxu0 %v5070_v5 }
  0x4a   : > { %3106 = vmatmul.mubr.msk.f32.gmra.mrb[16].mxu1 %vm471_vm0, %v1480_v46 }
  0x4b   : > { %1600 = vmatprep.mubr.f32.mxu1 %v5070_v5 }
  0x4c   : > { %3070 = vmatmul.mubr.msk.f32.vlgmr.msra.gmra.mrb[0].mxu0 %vm471_vm0, %v3937_v6  ;;  %v1489_v6 = vsel %vm446_vm1, %v1487_v19, %v1488_v40 }
  0x4d   : > { %792 = vmatprep.mubr.f32.mxu0 %v5070_v5  ;;  %982 = vmatpush1.msra.mxu0 %v426_v58  ;;  %v1224_v58 = vlaneseq }
  0x4e   : > { %3107 = vmatmul.mubr.msk.f32.gmra.mrb[18].mxu1 %vm471_vm0, %v1483_v0 }
  0x4f   : > { %1606 = vmatprep.mubr.f32.mxu1 %v5070_v5  ;;  %v4518_v40 = vshrl.u32 %v1224_v58, 7 }
  0x50   : > { %3071 = vmatmul.mubr.msk.f32.gmra.mrb[2].mxu0 %vm471_vm0, %v3940_v7  ;;  %v1440_v7 = vld [vmem:[%s5063_s4] sm:$0xff] }
  0x51   : > { %798 = vmatprep.mubr.f32.mxu0 %v5070_v5 }
  0x52   : > { %3108 = vmatmul.mubr.msk.f32.gmra.mrb[20].mxu1 %vm471_vm0, %v1486_v32 }
  0x53   : > { %1612 = vmatprep.mubr.f32.mxu1 %v5070_v5 }
  0x54   : > { %3072 = vmatmul.mubr.msk.f32.gmra.mrb[4].mxu0 %vm471_vm0, %v3947_v10  ;;  %v1447_v10 = vld [vmem:[%s5063_s4 + $0x38] sm:$0xff] }
  0x55   : > { %804 = vmatprep.mubr.f32.mxu0 %v5070_v5 }
  0x56   : > { %3109 = vmatmul.mubr.msk.f32.gmra.mrb[22].mxu1 %vm471_vm0, %v1489_v6 }
  0x57   : > { %3344 = vmatprep.mubr.msk.f32.mxu1 %vm471_vm0, %v1468_v59 }
  0x58   : > { %3073 = vmatmul.mubr.msk.f32.gmra.mrb[6].mxu0 %vm471_vm0, %v3959_v15  ;;  %v1446_v15 = vld [vmem:[%s5063_s4 + $0x30] sm:$0xff] }
  0x59   : > { %810 = vmatprep.mubr.f32.mxu0 %v5070_v5 }
  0x5a   : > { %3345 = vmatmul.mubr.msk.f32.vlgmr.msra.gmra.mrb[24].mxu1 %vm471_vm0, %v1471_v43  ;;  %v2484_v43 = vld [vmem:[%s5065_s6 + $0xe0] sm:$0xff] }
  0x5b   : > { %1741 = vmatpush1.msra.mxu1 %v1440_v7  ;;  %3347 = vmatprep.mubr.msk.f32.mxu1 %vm471_vm0, %v1474_v56  ;;  %v3438_v63 = vpack.c.bf16 %v2485_v44, %v2484_v43  ;;  %v3440_v56 = vpack.c.bf16 %v2469_v17, %v2468_v45 }
  0x5c   : > { %3356 = vmatprep.subr.mxu1 %v1442_v20  ;;  %3074 = vmatmul.mubr.msk.f32.gmra.mrb[8].mxu0 %vm471_vm0, %v3965_v18  ;;  %v1448_v18 = vld [vmem:[%s5063_s4 + $0x40] sm:$0xff] }
  0x5d   : > { %816 = vmatprep.mubr.f32.mxu0 %v5070_v5 }
  0x5e   : > { %3348 = vmatmul.mubr.msk.f32.gmra.mrb[26].mxu1 %vm471_vm0, %v1477_v22  ;;  %v3442_v22 = vpack.c.bf16 %v2487_v48, %v2486_v9 }
  0x5f   : > { %3350 = vmatprep.mubr.msk.f32.mxu1 %vm471_vm0, %v1480_v46  ;;  %v3444_v46 = vpack.c.bf16 %v2471_v49, %v2470_v30 }
  0x60   : > { %3075 = vmatmul.mubr.msk.f32.gmra.mrb[10].mxu0 %vm471_vm0, %v3983_v24  ;;  %v2472_v24 = vld [vmem:[%s5065_s6 + $0x80] sm:$0xff] }
  0x61   : > { %822 = vmatprep.mubr.f32.mxu0 %v5070_v5 }
  0x62   : > { %3351 = vmatmul.mubr.msk.f32.gmra.mrb[28].mxu1 %vm471_vm0, %v1483_v0 }
  0x63   : > { %3353 = vmatprep.mubr.msk.f32.mxu1 %vm471_vm0, %v1486_v32 }
  0x64   : > { %3076 = vmatmul.mubr.msk.f32.gmra.mrb[12].mxu0 %vm471_vm0, %v3988_v27  ;;  %v2473_v27 = vld [vmem:[%s5065_s6 + $0x88] sm:$0xff] }
  0x65   : > { %828 = vmatprep.mubr.f32.mxu0 %v5070_v5 }
  0x66   : > { %3354 = vmatmul.mubr.msk.f32.gmra.mrb[30].mxu1 %vm471_vm0, %v1489_v6 }
  0x67   : > { %1804 = vmatprep.mubr.f32.mxu1 %v5070_v5 }
  0x68   : > { %3077 = vmatmul.mubr.msk.f32.gmra.mrb[14].mxu0 %vm471_vm0, %v4004_v35  ;;  %v3414_v35 = vpack.c.bf16 %v2473_v27, %v2472_v24 }
  0x69   : > { %1045 = vmatprep.mubr.f32.mxu0 %v5070_v5 }
  0x6a   : > { %3118 = vmatmul.mubr.msk.f32.vlgmr.msra.gmra.mrb[8].mxu1 %vm471_vm0, %v4052_v57  ;;  %3415 = vmatprep.subr.bf16.mxu0 %v3414_v35 }
  0x6b   : > { %3357 = vmatpush3.msra.mxu1 %v1442_v20  ;;  %1810 = vmatprep.mubr.f32.mxu1 %v5070_v5  ;;  %v1234_v20 = vsub.s32 2, %v4518_v40 }
  0x6c   : > { %1998 = vmatprep.subr.mxu1 %v1447_v10  ;;  %3086 = vmatmul.mubr.msk.f32.vlgmr.msra.gmra.mrb[0].mxu0 %vm471_vm0, %v4010_v39  ;;  %v2456_v39 = vld [vmem:[%s5065_s6] sm:$0xff] }
  0x6d   : > { %1051 = vmatprep.mubr.f32.mxu0 %v5070_v5  ;;  %v4524_v10 = vld [vmem:[%s5062_s3] sm:$0x7] }
  0x6e   : > { %3119 = vmatmul.mubr.msk.f32.gmra.mrb[10].mxu1 %vm471_vm0, %v4084_v4 }
  0x6f   : > { %1816 = vmatprep.mubr.f32.mxu1 %v5070_v5 }
  0x70   : > { %3087 = vmatmul.mubr.msk.f32.gmra.mrb[2].mxu0 %vm471_vm0, %v4034_v50  ;;  %v2457_v50 = vld [vmem:[%s5065_s6 + $0x8] sm:$0xff] }
  0x71   : > { %1057 = vmatprep.mubr.f32.mxu0 %v5070_v5 }
  0x72   : > { %3120 = vmatmul.mubr.msk.f32.gmra.mrb[12].mxu1 %vm471_vm0, %v4087_v8 }
  0x73   : > { %1822 = vmatprep.mubr.f32.mxu1 %v5070_v5 }
  0x74   : > { %3088 = vmatmul.mubr.msk.f32.gmra.mrb[4].mxu0 %vm471_vm0, %v4044_v55  ;;  %v3416_v55 = vpack.c.bf16 %v2457_v50, %v2456_v39 }
  0x75   : > { %1063 = vmatprep.mubr.f32.mxu0 %v5070_v5 }
  0x76   : > { %3121 = vmatmul.mubr.msk.f32.gmra.mrb[14].mxu1 %vm471_vm0, %v4099_v13  ;;  %3417 = vmatpush3.bf16.msra.mxu0 %v3416_v55 }
  0x77   : > { %1828 = vmatprep.mubr.f32.mxu1 %v5070_v5 }
  0x78   : > { %3089 = vmatmul.mubr.msk.f32.gmra.mrb[6].mxu0 %vm471_vm0, %v4062_v61  ;;  %v2475_v61 = vld [vmem:[%s5065_s6 + $0x98] sm:$0xff] }
  0x79   : > { %1069 = vmatprep.mubr.f32.mxu0 %v5070_v5 }
  0x7a   : > { %3122 = vmatmul.mubr.msk.f32.gmra.mrb[16].mxu1 %vm471_vm0, %v4110_v23 }
  0x7b   : > { %1834 = vmatprep.mubr.f32.mxu1 %v5070_v5 }
  0x7c   : > { %3090 = vmatmul.mubr.msk.f32.gmra.mrb[8].mxu0 %vm471_vm0, %v4077_v1 }
  0x7d   : > { %1075 = vmatprep.mubr.f32.mxu0 %v5070_v5 }
  0x7e   : > { %3123 = vmatmul.mubr.msk.f32.gmra.mrb[18].mxu1 %vm471_vm0, %v4113_v25 }
  0x7f   : > { %1840 = vmatprep.mubr.f32.mxu1 %v5070_v5 }
  0x80   : > { %3091 = vmatmul.mubr.msk.f32.gmra.mrb[10].mxu0 %vm471_vm0, %v4096_v12 }
  0x81   : > { %1081 = vmatprep.mubr.f32.mxu0 %v5070_v5 }
  0x82   : > { %3124 = vmatmul.mubr.msk.f32.gmra.mrb[20].mxu1 %vm471_vm0, %v4138_v38 }
  0x83   : > { %1846 = vmatprep.mubr.f32.mxu1 %v5070_v5 }
  0x84   : > { %3092 = vmatmul.mubr.msk.f32.gmra.mrb[12].mxu0 %vm471_vm0, %v4158_v51 }
  0x85   : > { %1087 = vmatprep.mubr.f32.mxu0 %v5070_v5 }
  0x86   : > { %3125 = vmatmul.mubr.msk.f32.gmra.mrb[22].mxu1 %vm471_vm0, %v4181_v21 }
  0x87   : > { %3358 = vmatprep.mubr.msk.f32.mxu1 %vm471_vm0, %v4052_v57  ;;  %v2474_v57 = vld [vmem:[%s5065_s6 + $0x90] sm:$0xff] }
  0x88   : > { %3093 = vmatmul.mubr.msk.f32.gmra.mrb[14].mxu0 %vm471_vm0, %v4191_v28  ;;  %v3418_v1 = vpack.c.bf16 %v2475_v61, %v2474_v57 }
  0x8a   : > { %3359 = vmatmul.mubr.msk.f32.vlgmr.msra.gmra.mrb[24].mxu1 %vm471_vm0, %v4084_v4  ;;  %v2458_v4 = vld [vmem:[%s5065_s6 + $0x10] sm:$0xff]  ;;  %3419 = vmatprep.subr.bf16.mxu0 %v3418_v1 }
  0x8b   : > { %1999 = vmatpush1.msra.mxu1 %v1446_v15  ;;  %3361 = vmatprep.mubr.msk.f32.mxu1 %vm471_vm0, %v4087_v8  ;;  %v2459_v8 = vld [vmem:[%s5065_s6 + $0x18] sm:$0xff]  ;;  %v1235_v15 = vrot.slane %v4524_v10, %v1234_v20 }
  0x8c   : > { %3370 = vmatprep.subr.mxu1 %v1448_v18  ;;  %v3420_v12 = vpack.c.bf16 %v2459_v8, %v2458_v4 }
  0x8e   : > { %3362 = vmatmul.mubr.msk.f32.gmra.mrb[26].mxu1 %vm471_vm0, %v4099_v13  ;;  %3421 = vmatpush3.bf16.msra.mxu0 %v3420_v12  ;;  %v2476_v13 = vld [vmem:[%s5065_s6 + $0xa0] sm:$0xff] }
  0x8f   : > { %3364 = vmatprep.mubr.msk.f32.mxu1 %vm471_vm0, %v4110_v23  ;;  %v2477_v23 = vld [vmem:[%s5065_s6 + $0xa8] sm:$0xff] }
  0x92   : > { %3365 = vmatmul.mubr.msk.f32.gmra.mrb[28].mxu1 %vm471_vm0, %v4113_v25  ;;  %v3422_v25 = vpack.c.bf16 %v2477_v23, %v2476_v13 }
  0x93   : > { %3367 = vmatprep.mubr.msk.f32.mxu1 %vm471_vm0, %v4138_v38 }
  0x94   : > { %3423 = vmatprep.subr.bf16.mxu0 %v3422_v25 }
  0x96   : > { %3368 = vmatmul.mubr.msk.f32.gmra.mrb[30].mxu1 %vm471_vm0, %v4181_v21  ;;  %v2480_v21 = vld [vmem:[%s5065_s6 + $0xc0] sm:$0xff] }
  0x97   : > { %2062 = vmatprep.mubr.f32.mxu1 %v5070_v5  ;;  %v3430_v28 = vpack.c.bf16 %v2481_v26, %v2480_v21 }
  0x9a   : > { %3134 = vmatmul.mubr.msk.f32.vlgmr.msra.gmra.mrb[8].mxu1 %vm471_vm0, %v4127_v33 }
  0x9b   : > { %3371 = vmatpush3.msra.mxu1 %v1448_v18  ;;  %2068 = vmatprep.mubr.f32.mxu1 %v5070_v5 }
  0x9e   : > { %3135 = vmatmul.mubr.msk.f32.gmra.mrb[10].mxu1 %vm471_vm0, %v4130_v34 }
  0x9f   : > { %2074 = vmatprep.mubr.f32.mxu1 %v5070_v5 }
  0xa2   : > { %3136 = vmatmul.mubr.msk.f32.gmra.mrb[12].mxu1 %vm471_vm0, %v4144_v41 }
  0xa3   : > { %2080 = vmatprep.mubr.f32.mxu1 %v5070_v5 }
  0xa6   : > { %3137 = vmatmul.mubr.msk.f32.gmra.mrb[14].mxu1 %vm471_vm0, %v4153_v47 }
  0xa7   : > { %2086 = vmatprep.mubr.f32.mxu1 %v5070_v5 }
  0xaa   : > { %3138 = vmatmul.mubr.msk.f32.gmra.mrb[16].mxu1 %vm471_vm0, %v4161_v52 }
  0xab   : > { %2092 = vmatprep.mubr.f32.mxu1 %v5070_v5 }
  0xae   : > { %3139 = vmatmul.mubr.msk.f32.gmra.mrb[18].mxu1 %vm471_vm0, %v4164_v54 }
  0xaf   : > { %2098 = vmatprep.mubr.f32.mxu1 %v5070_v5 }
  0xb2   : > { %3140 = vmatmul.mubr.msk.f32.gmra.mrb[20].mxu1 %vm471_vm0, %v4169_v11 }
  0xb3   : > { %2104 = vmatprep.mubr.f32.mxu1 %v5070_v5 }
  0xb6   : > { %3141 = vmatmul.mubr.msk.f32.gmra.mrb[22].mxu1 %vm471_vm0, %v4198_v3 }
  0xb7   : > { %3372 = vmatprep.mubr.msk.f32.mxu1 %vm471_vm0, %v4127_v33  ;;  %v2460_v33 = vld [vmem:[%s5065_s6 + $0x20] sm:$0xff] }
  0xba   : > { %3373 = vmatmul.mubr.msk.f32.vlgmr.msra.gmra.mrb[24].mxu1 %vm471_vm0, %v4130_v34  ;;  %v2461_v34 = vld [vmem:[%s5065_s6 + $0x28] sm:$0xff] }
  0xbb   : > { %3375 = vmatprep.mubr.msk.f32.mxu1 %vm471_vm0, %v4144_v41  ;;  %v3424_v38 = vpack.c.bf16 %v2461_v34, %v2460_v33  ;;  %v2478_v41 = vld [vmem:[%s5065_s6 + $0xb0] sm:$0xff] }
  0xbd   : > { %3425 = vmatpush3.bf16.msra.mxu0 %v3424_v38 }
  0xbe   : > { %3376 = vmatmul.mubr.msk.f32.gmra.mrb[26].mxu1 %vm471_vm0, %v4153_v47  ;;  %v2479_v47 = vld [vmem:[%s5065_s6 + $0xb8] sm:$0xff] }
  0xbf   : > { %3378 = vmatprep.mubr.msk.f32.mxu1 %vm471_vm0, %v4161_v52  ;;  %v3426_v51 = vpack.c.bf16 %v2479_v47, %v2478_v41  ;;  %v2462_v52 = vld [vmem:[%s5065_s6 + $0x30] sm:$0xff] }
  0xc1   : > { %3427 = vmatprep.subr.bf16.mxu0 %v3426_v51 }
  0xc2   : > { %3379 = vmatmul.mubr.msk.f32.gmra.mrb[28].mxu1 %vm471_vm0, %v4164_v54  ;;  %v2463_v54 = vld [vmem:[%s5065_s6 + $0x38] sm:$0xff] }
  0xc3   : > { %3381 = vmatprep.mubr.msk.f32.mxu1 %vm471_vm0, %v4169_v11  ;;  %v3428_v11 = vpack.c.bf16 %v2463_v54, %v2462_v52 }
  0xc5   : > { %3429 = vmatpush3.bf16.msra.mxu0 %v3428_v11 }
  0xc6   : > { %3382 = vmatmul.mubr.msk.f32.gmra.mrb[30].mxu1 %vm471_vm0, %v4198_v3  ;;  %3431 = vmatprep.subr.bf16.mxu0 %v3430_v28  ;;  %v2482_v3 = vld [vmem:[%s5065_s6 + $0xd0] sm:$0xff] }
  0xc7   : > { %v3434_v59 = vpack.c.bf16 %v2483_v36, %v2482_v3 }
  0xc9   : > { %3433 = vmatpush3.bf16.msra.mxu0 %v3432_v2 }
  0xca   : > { %3435 = vmatprep.subr.bf16.mxu0 %v3434_v59 }
  0xcd   : > { %3437 = vmatpush3.bf16.msra.mxu0 %v3436_v42 }
  0xce   : > { %3439 = vmatprep.subr.bf16.mxu0 %v3438_v63 }
  0xd1   : > { %3441 = vmatpush3.bf16.msra.mxu0 %v3440_v56 }
  0xd2   : > { %3443 = vmatprep.subr.bf16.mxu0 %v3442_v22 }
  0xd5   : > { %3445 = vmatpush3.bf16.msra.mxu0 %v3444_v46 }
  0xd6   : > { %3446 = vmatprep.subr.bf16.mxu0 %v5071_v60 }
  0xfd   : > { %v3332_v14 = vpop.f32.mrb[0].mxu1 }
  0xfe   : > { %v1160_v0 = vpop.f32.mrb[1].mxu1 }
 0x101   : > { %v3335_v31 = vpop.f32.mrb[2].mxu1 }
 0x102   : > { %v1170_v16 = vpop.f32.mrb[3].mxu1 }
 0x105   : > { %v3338_v32 = vpop.f32.mrb[4].mxu1 }
 0x106   : > { %v1180_v19 = vpop.f32.mrb[5].mxu1 }
 0x109   : > { %v3341_v6 = vpop.f32.mrb[6].mxu1 }
 0x10a   : > { %v1190_v7 = vpop.f32.mrb[7].mxu1 }
 0x10f   : > { %v3304_v18 = vpop.f32.mrb[16].mxu0 }
 0x110   : > { %v3498_v24 = vadd.f32 %v3332_v14, %v3304_v18  ;;  %v667_v27 = vpop.f32.mrb[17].mxu0 }
 0x111   : > { %v3499_v35 = vadd.f32 %v1160_v0, %v667_v27 }
 0x112   : > { %v1244_v39 = vadd.f32 %v3498_v24, %v1235_v15 }
 0x113   : > { %v1241_v50 = vadd.f32 %v3499_v35, %v1235_v15  ;;  %v3307_v55 = vpop.f32.mrb[18].mxu0 }
 0x114   : > { %3637 = vtanh.f32 %v1244_v39  ;;  %v3500_v57 = vadd.f32 %v3335_v31, %v3307_v55  ;;  %v677_v61 = vpop.f32.mrb[19].mxu0 }
 0x115   : > { %3639 = vtanh.f32 %v1241_v50  ;;  %v3501_v1 = vadd.f32 %v1170_v16, %v677_v61 }
 0x116   : > { %v1250_v4 = vadd.f32 %v3500_v57, %v1235_v15 }
 0x117   : > { %v1247_v8 = vadd.f32 %v3501_v1, %v1235_v15  ;;  %v3310_v12 = vpop.f32.mrb[20].mxu0 }
 0x118   : > { %3641 = vtanh.f32 %v1250_v4  ;;  %v3502_v13 = vadd.f32 %v3338_v32, %v3310_v12  ;;  %v687_v23 = vpop.f32.mrb[21].mxu0 }
 0x119   : > { %3643 = vtanh.f32 %v1247_v8  ;;  %v3503_v25 = vadd.f32 %v1180_v19, %v687_v23 }
 0x11a   : > { %v1256_v33 = vadd.f32 %v3502_v13, %v1235_v15 }
 0x11b   : > { %v1253_v34 = vadd.f32 %v3503_v25, %v1235_v15  ;;  %v3313_v38 = vpop.f32.mrb[22].mxu0 }
 0x11c   : > { %3645 = vtanh.f32 %v1256_v33  ;;  %v3504_v41 = vadd.f32 %v3341_v6, %v3313_v38  ;;  %v697_v47 = vpop.f32.mrb[23].mxu0 }
 0x11d   : > { %3647 = vtanh.f32 %v1253_v34  ;;  %v3505_v51 = vadd.f32 %v1190_v7, %v697_v47 }
 0x11e   : > { %v3638_v52 = vpop.eup %3637  ;;  %v1262_v54 = vadd.f32 %v3504_v41, %v1235_v15 }
 0x11f   : > { %v3640_v11 = vpop.eup %3639  ;;  %v1319_v21 = vsel %vm1299_vm3, %v3638_v52, -inf  ;;  %v1259_v26 = vadd.f32 %v3505_v51, %v1235_v15 }
 0x120   : > { %v1320_v28 = vrot.slane %v1319_v21, 4  ;;  %v1300_v29 = vsel %vm1299_vm3, %v3640_v11, -inf  ;;  %3649 = vtanh.f32 %v1262_v54 }
 0x121   : > { %v1301_v53 = vrot.slane %v1300_v29, 4  ;;  %3651 = vtanh.f32 %v1259_v26 }
 0x122   : > { %v3642_v2 = vpop.eup %3641  ;;  %v1321_v3 = vmax.f32 %v1319_v21, %v1320_v28 }
 0x123   : > { %v3644_v36 = vpop.eup %3643  ;;  %v1302_v59 = vmax.f32 %v1300_v29, %v1301_v53  ;;  %v1357_v62 = vsel %vm1299_vm3, %v3642_v2, -inf }
 0x124   : > { %v1322_v37 = vrot.slane %v1321_v3, 2  ;;  %v1358_v42 = vrot.slane %v1357_v62, 4  ;;  %v1338_v43 = vsel %vm1299_vm3, %v3644_v36, -inf }
 0x125   : > { %v1303_v44 = vrot.slane %v1302_v59, 2  ;;  %v1339_v63 = vrot.slane %v1338_v43, 4 }
 0x126   : > { %v3646_v45 = vpop.eup %3645  ;;  %v1323_v17 = vmax.f32 %v1321_v3, %v1322_v37  ;;  %v1359_v56 = vmax.f32 %v1357_v62, %v1358_v42  ;;  %v1230_v37 = vsub.s32 1, %v4518_v40 }
 0x127   : > { %v3648_v9 = vpop.eup %3647  ;;  %v1304_v48 = vmax.f32 %v1302_v59, %v1303_v44  ;;  %v1340_v22 = vmax.f32 %v1338_v43, %v1339_v63  ;;  %v1395_v30 = vsel %vm1299_vm3, %v3646_v45, -inf  ;;  %v1226_v59 = vsub.s32 0, %v4518_v40  ;;  %v4770_v40 = vld [vmem:[%s5067_s8 + $0x50] sm:$0xff] }
 0x128   : > { %v1324_v49 = vrot.slane %v1323_v17, 1  ;;  %v1360_v46 = vrot.slane %v1359_v56, 2  ;;  %v1396_v14 = vrot.slane %v1395_v30, 4  ;;  %v1376_v0 = vsel %vm1299_vm3, %v3648_v9, -inf }
 0x129   : > { %v1305_v31 = vrot.slane %v1304_v48, 1  ;;  %v1341_v16 = vrot.slane %v1340_v22, 2  ;;  %v1377_v58 = vrot.slane %v1376_v0, 4  ;;  %v4551_v44 = vrot.slane %v4524_v10, %v1226_v59 }
 0x12a   : > { %v3650_v32 = vpop.eup %3649  ;;  %v1325_v19 = vmax.f32 %v1323_v17, %v1324_v49  ;;  %v1361_v6 = vmax.f32 %v1359_v56, %v1360_v46  ;;  %v1397_v7 = vmax.f32 %v1395_v30, %v1396_v14  ;;  %v4556_v63 = vrot.slane %v4524_v10, %v1230_v37 }
 0x12b   : > { %v3652_v15 = vpop.eup %3651  ;;  %v1306_v18 = vmax.f32 %v1304_v48, %v1305_v31  ;;  %v1342_v24 = vmax.f32 %v1340_v22, %v1341_v16  ;;  %v1378_v27 = vmax.f32 %v1376_v0, %v1377_v58  ;;  %v1433_v35 = vsel %vm1299_vm3, %v3650_v32, -inf }
 0x12c   : > { %v1362_v39 = vrot.slane %v1361_v6, 1  ;;  %v1398_v50 = vrot.slane %v1397_v7, 2  ;;  %v1434_v55 = vrot.slane %v1433_v35, 4  ;;  %v1414_v57 = vsel %vm1299_vm3, %v3652_v15, -inf }
 0x12d   : > { %v1343_v61 = vrot.slane %v1342_v24, 1  ;;  %v1379_v1 = vrot.slane %v1378_v27, 2  ;;  %v1415_v4 = vrot.slane %v1414_v57, 4  ;;  %v2546_v8 = vsel %vm2525_vm4, %v1325_v19, %v1306_v18 }
 0x12e   : > { %v1399_v12 = vmax.f32 %v1397_v7, %v1398_v50  ;;  %v1435_v13 = vmax.f32 %v1433_v35, %v1434_v55  ;;  %v1363_v34 = vmax.f32 %v1361_v6, %v1362_v39 }
 0x12f   : > { %v1344_v23 = vmax.f32 %v1342_v24, %v1343_v61  ;;  %v1380_v25 = vmax.f32 %v1378_v27, %v1379_v1  ;;  %v1416_v33 = vmax.f32 %v1414_v57, %v1415_v4 }
 0x130   : > { %v1400_v38 = vrot.slane %v1399_v12, 1  ;;  %v1436_v41 = vrot.slane %v1435_v13, 2 }
 0x131   : > { %v1381_v47 = vrot.slane %v1380_v25, 1  ;;  %v1417_v51 = vrot.slane %v1416_v33, 2  ;;  %v2547_v52 = vsel %vm2527_vm5, %v1344_v23, %v2546_v8 }
 0x132   : > { %v1437_v54 = vmax.f32 %v1435_v13, %v1436_v41  ;;  %v2548_v11 = vsel %vm2529_vm6, %v1363_v34, %v2547_v52  ;;  %v1401_v28 = vmax.f32 %v1399_v12, %v1400_v38 }
 0x133   : > { %v1382_v21 = vmax.f32 %v1380_v25, %v1381_v47  ;;  %v1418_v26 = vmax.f32 %v1416_v33, %v1417_v51 }
 0x134   : > { %v1438_v29 = vrot.slane %v1437_v54, 1 }
 0x135   : > { %v1419_v53 = vrot.slane %v1418_v26, 1  ;;  %v2549_v2 = vsel %vm2531_vm7, %v1382_v21, %v2548_v11 }
 0x136   : > { %v2550_v3 = vsel %vm2533_vm8, %v1401_v28, %v2549_v2  ;;  %v1439_v62 = vmax.f32 %v1437_v54, %v1438_v29 }
 0x137   : > { %v1420_v36 = vmax.f32 %v1418_v26, %v1419_v53 }
 0x139   : > { %v2551_v42 = vsel %vm2535_vm9, %v1420_v36, %v2550_v3 }
 0x13a   : > { %v4546_v43 = vsel %vm2537_vm10, %v1439_v62, %v2551_v42 }
 0x13f   : > { %v1047_v45 = vpop.f32.mrb[0].mxu0 }
 0x140   : > { %v1239_v17 = vadd.f32 %v4551_v44, %v1047_v45  ;;  %v1049_v56 = vpop.f32.mrb[1].mxu0 }
 0x141   : > { %v1240_v9 = vadd.f32 %v4556_v63, %v1049_v56 }
 0x142   : > { %3653 = vtanh.f32 %v1239_v17 }
 0x143   : > { %3655 = vtanh.f32 %v1240_v9  ;;  %v1053_v48 = vpop.f32.mrb[2].mxu0 }
 0x144   : > { %v1242_v22 = vadd.f32 %v4551_v44, %v1053_v48  ;;  %v1055_v30 = vpop.f32.mrb[3].mxu0 }
 0x145   : > { %v1243_v49 = vadd.f32 %v4556_v63, %v1055_v30 }
 0x146   : > { %3657 = vtanh.f32 %v1242_v22 }
 0x147   : > { %3659 = vtanh.f32 %v1243_v49  ;;  %v1059_v46 = vpop.f32.mrb[4].mxu0 }
 0x148   : > { %v1245_v10 = vadd.f32 %v4551_v44, %v1059_v46  ;;  %v1061_v14 = vpop.f32.mrb[5].mxu0 }
 0x149   : > { %v1246_v0 = vadd.f32 %v4556_v63, %v1061_v14 }
 0x14a   : > { %3661 = vtanh.f32 %v1245_v10 }
 0x14b   : > { %3663 = vtanh.f32 %v1246_v0  ;;  %v1065_v31 = vpop.f32.mrb[6].mxu0 }
 0x14c   : > { %v3654_v16 = vpop.eup %3653  ;;  %v1248_v58 = vadd.f32 %v4551_v44, %v1065_v31  ;;  %v1067_v32 = vpop.f32.mrb[7].mxu0 }
 0x14d   : > { %v3656_v19 = vpop.eup %3655  ;;  %v1287_v6 = vrot.slane %v3654_v16, 4  ;;  %v1249_v7 = vadd.f32 %v4556_v63, %v1067_v32 }
 0x14e   : > { %v1293_v15 = vrot.slane %v3656_v19, 4  ;;  %3665 = vtanh.f32 %v1248_v58 }
 0x14f   : > { %v1288_v18 = vmax.f32 %v3654_v16, %v1287_v6  ;;  %3667 = vtanh.f32 %v1249_v7  ;;  %v1071_v24 = vpop.f32.mrb[8].mxu0 }
 0x150   : > { %v3658_v27 = vpop.eup %3657  ;;  %v1294_v35 = vmax.f32 %v3656_v19, %v1293_v15  ;;  %v1251_v39 = vadd.f32 %v4551_v44, %v1071_v24  ;;  %v1073_v50 = vpop.f32.mrb[9].mxu0 }
 0x151   : > { %v3660_v55 = vpop.eup %3659  ;;  %v1289_v57 = vrot.slane %v1288_v18, 2  ;;  %v1307_v61 = vrot.slane %v3658_v27, 4  ;;  %v1252_v1 = vadd.f32 %v4556_v63, %v1073_v50 }
 0x152   : > { %v1295_v4 = vrot.slane %v1294_v35, 2  ;;  %v1313_v8 = vrot.slane %v3660_v55, 4  ;;  %3669 = vtanh.f32 %v1251_v39 }
 0x153   : > { %v1290_v12 = vmax.f32 %v1288_v18, %v1289_v57  ;;  %v1308_v13 = vmax.f32 %v3658_v27, %v1307_v61  ;;  %3671 = vtanh.f32 %v1252_v1  ;;  %v1077_v23 = vpop.f32.mrb[10].mxu0 }
 0x154   : > { %v3662_v25 = vpop.eup %3661  ;;  %v1296_v33 = vmax.f32 %v1294_v35, %v1295_v4  ;;  %v1314_v34 = vmax.f32 %v3660_v55, %v1313_v8  ;;  %v1254_v38 = vadd.f32 %v4551_v44, %v1077_v23  ;;  %v1079_v41 = vpop.f32.mrb[11].mxu0 }
 0x155   : > { %v3664_v47 = vpop.eup %3663  ;;  %v1291_v51 = vrot.slane %v1290_v12, 1  ;;  %v1309_v52 = vrot.slane %v1308_v13, 2  ;;  %v1326_v54 = vrot.slane %v3662_v25, 4  ;;  %v1255_v11 = vadd.f32 %v4556_v63, %v1079_v41 }
 0x156   : > { %v1297_v21 = vrot.slane %v1296_v33, 1  ;;  %v1315_v26 = vrot.slane %v1314_v34, 2  ;;  %v1332_v28 = vrot.slane %v3664_v47, 4  ;;  %3673 = vtanh.f32 %v1254_v38 }
 0x157   : > { %v1292_v29 = vmax.f32 %v1290_v12, %v1291_v51  ;;  %v1310_v53 = vmax.f32 %v1308_v13, %v1309_v52  ;;  %v1327_v2 = vmax.f32 %v3662_v25, %v1326_v54  ;;  %3675 = vtanh.f32 %v1255_v11  ;;  %v1083_v3 = vpop.f32.mrb[12].mxu0 }
 0x158   : > { %v3666_v36 = vpop.eup %3665  ;;  %v1298_v62 = vmax.f32 %v1296_v33, %v1297_v21  ;;  %v1316_v42 = vmax.f32 %v1314_v34, %v1315_v26  ;;  %v1333_v45 = vmax.f32 %v3664_v47, %v1332_v28  ;;  %v1257_v17 = vadd.f32 %v4551_v44, %v1083_v3  ;;  %v1085_v56 = vpop.f32.mrb[13].mxu0 }
 0x159   : > { %v3668_v9 = vpop.eup %3667  ;;  %v1311_v48 = vrot.slane %v1310_v53, 1  ;;  %v1328_v22 = vrot.slane %v1327_v2, 2  ;;  %v1345_v30 = vrot.slane %v3666_v36, 4  ;;  %v1258_v49 = vadd.f32 %v4556_v63, %v1085_v56 }
 0x15a   : > { %v1317_v46 = vrot.slane %v1316_v42, 1  ;;  %v1334_v10 = vrot.slane %v1333_v45, 2  ;;  %v1351_v14 = vrot.slane %v3668_v9, 4  ;;  %3677 = vtanh.f32 %v1257_v17 }
 0x15b   : > { %v1312_v0 = vmax.f32 %v1310_v53, %v1311_v48  ;;  %v1329_v31 = vmax.f32 %v1327_v2, %v1328_v22  ;;  %v1346_v16 = vmax.f32 %v3666_v36, %v1345_v30  ;;  %3679 = vtanh.f32 %v1258_v49  ;;  %v1089_v58 = vpop.f32.mrb[14].mxu0  ;;  %v4581_v36 = vld [vmem:[%s5064_s5] sm:$0x7] }
 0x15c   : > { %v3670_v32 = vpop.eup %3669  ;;  %v1318_v19 = vmax.f32 %v1316_v42, %v1317_v46  ;;  %v1335_v6 = vmax.f32 %v1333_v45, %v1334_v10  ;;  %v1352_v7 = vmax.f32 %v3668_v9, %v1351_v14  ;;  %v1260_v15 = vadd.f32 %v4551_v44, %v1089_v58  ;;  %v1091_v18 = vpop.f32.mrb[15].mxu0 }
 0x15d   : > { %v3672_v24 = vpop.eup %3671  ;;  %v1330_v27 = vrot.slane %v1329_v31, 1  ;;  %v1347_v35 = vrot.slane %v1346_v16, 2  ;;  %v1364_v39 = vrot.slane %v3670_v32, 4  ;;  %v1261_v50 = vadd.f32 %v4556_v63, %v1091_v18 }
 0x15e   : > { %v1336_v55 = vrot.slane %v1335_v6, 1  ;;  %v1353_v57 = vrot.slane %v1352_v7, 2  ;;  %v1370_v61 = vrot.slane %v3672_v24, 4  ;;  %3681 = vtanh.f32 %v1260_v15 }
 0x15f   : > { %v1331_v1 = vmax.f32 %v1329_v31, %v1330_v27  ;;  %v1348_v4 = vmax.f32 %v1346_v16, %v1347_v35  ;;  %v1365_v8 = vmax.f32 %v3670_v32, %v1364_v39  ;;  %3683 = vtanh.f32 %v1261_v50 }
 0x160   : > { %v3674_v12 = vpop.eup %3673  ;;  %v1337_v13 = vmax.f32 %v1335_v6, %v1336_v55  ;;  %v1354_v23 = vmax.f32 %v1352_v7, %v1353_v57  ;;  %v1371_v25 = vmax.f32 %v3672_v24, %v1370_v61  ;;  %v2539_v44 = vsel %vm2525_vm4, %v1318_v19, %v1298_v62 }
 0x161   : > { %v3676_v33 = vpop.eup %3675  ;;  %v1349_v34 = vrot.slane %v1348_v4, 1  ;;  %v1366_v38 = vrot.slane %v1365_v8, 2  ;;  %v1383_v41 = vrot.slane %v3674_v12, 4  ;;  %v2526_v63 = vsel %vm2525_vm4, %v1312_v0, %v1292_v29 }
 0x162   : > { %v1355_v47 = vrot.slane %v1354_v23, 1  ;;  %v1372_v51 = vrot.slane %v1371_v25, 2  ;;  %v1389_v52 = vrot.slane %v3676_v33, 4  ;;  %v2540_v54 = vsel %vm2527_vm5, %v1337_v13, %v2539_v44 }
 0x163   : > { %v1350_v11 = vmax.f32 %v1348_v4, %v1349_v34  ;;  %v1367_v21 = vmax.f32 %v1365_v8, %v1366_v38  ;;  %v1384_v26 = vmax.f32 %v3674_v12, %v1383_v41  ;;  %v2528_v28 = vsel %vm2527_vm5, %v1331_v1, %v2526_v63 }
 0x164   : > { %v3678_v53 = vpop.eup %3677  ;;  %v1373_v2 = vmax.f32 %v1371_v25, %v1372_v51  ;;  %v1390_v3 = vmax.f32 %v3676_v33, %v1389_v52  ;;  %v1356_v62 = vmax.f32 %v1354_v23, %v1355_v47  ;;  %v4588_v14 = vrot.slane %v4581_v36, %v1226_v59  ;;  %v2488_v52 = vld [vmem:[%s5065_s6 + $0x100] sm:$0xff] }
 0x165   : > { %v3680_v29 = vpop.eup %3679  ;;  %v1368_v42 = vrot.slane %v1367_v21, 1  ;;  %v1385_v45 = vrot.slane %v1384_v26, 2  ;;  %v1402_v17 = vrot.slane %v3678_v53, 4  ;;  %v2530_v56 = vsel %vm2529_vm6, %v1350_v11, %v2528_v28  ;;  %v2489_v28 = vld [vmem:[%s5065_s6 + $0x108] sm:$0xff] }
 0x166   : > { %v1391_v9 = vrot.slane %v1390_v3, 2  ;;  %v1408_v48 = vrot.slane %v3680_v29, 4  ;;  %v1374_v22 = vrot.slane %v1373_v2, 1  ;;  %v2541_v30 = vsel %vm2529_vm6, %v1356_v62, %v2540_v54 }
 0x167   : > { %v1369_v49 = vmax.f32 %v1367_v21, %v1368_v42  ;;  %v1386_v46 = vmax.f32 %v1384_v26, %v1385_v45  ;;  %v1403_v10 = vmax.f32 %v3678_v53, %v1402_v17  ;;  %v4593_v16 = vrot.slane %v4581_v36, %v1230_v37  ;;  %v4612_v53 = vld [vmem:[%s5065_s6 + $0x110] sm:$0xff]  ;;  %v4624_v42 = vld [vmem:[%s5065_s6 + $0x120] sm:$0xff]  ;;  %v4629_v45 = vld [vmem:[%s5065_s6 + $0x128] sm:$0xf] }
 0x168   : > { %v3682_v0 = vpop.eup %3681  ;;  %v1409_v31 = vmax.f32 %v3680_v29, %v1408_v48  ;;  %v1375_v58 = vmax.f32 %v1373_v2, %v1374_v22  ;;  %v1392_v32 = vmax.f32 %v1390_v3, %v1391_v9  ;;  %v4617_v2 = vld [vmem:[%s5065_s6 + $0x118] sm:$0xff]  ;;  %v4634_v17 = vld [vmem:[%s5067_s8 + $0x80] sm:$0xff]  ;;  %v4649_v22 = vld [vmem:[%s5067_s8 + $0x8] sm:$0xff] }
 0x169   : > { %v3684_v19 = vpop.eup %3683  ;;  %v1387_v6 = vrot.slane %v1386_v46, 1  ;;  %v1404_v7 = vrot.slane %v1403_v10, 2  ;;  %v1421_v15 = vrot.slane %v3682_v0, 4  ;;  %v2532_v18 = vsel %vm2531_vm7, %v1369_v49, %v2530_v56  ;;  %v4639_v56 = vld [vmem:[%s5067_s8 + $0x88] sm:$0xff]  ;;  %v4644_v48 = vld [vmem:[%s5067_s8] sm:$0xff] }
 0x16a   : > { %v1427_v24 = vrot.slane %v3684_v19, 4  ;;  %v1393_v27 = vrot.slane %v1392_v32, 1  ;;  %v1410_v35 = vrot.slane %v1409_v31, 2  ;;  %v2542_v59 = vsel %vm2531_vm7, %v1375_v58, %v2541_v30  ;;  %v4654_v30 = vld [vmem:[%s5067_s8 + $0x90] sm:$0xff] }
 0x16b   : > { %v1405_v39 = vmax.f32 %v1403_v10, %v1404_v7  ;;  %v1422_v50 = vmax.f32 %v3682_v0, %v1421_v15  ;;  %v1388_v55 = vmax.f32 %v1386_v46, %v1387_v6  ;;  %v4659_v10 = vld [vmem:[%s5067_s8 + $0x98] sm:$0xff]  ;;  %v4664_v0 = vld [vmem:[%s5067_s8 + $0x10] sm:$0xff]  ;;  %v3447_v6 = vpack.c.bf16 %v2489_v28, %v2488_v52  ;;  %v4676_v7 = vld [vmem:[%s5067_s8 + $0xa0] sm:$0xff] }
 0x16c   : > { %v1394_v61 = vmax.f32 %v1392_v32, %v1393_v27  ;;  %v1411_v37 = vmax.f32 %v1409_v31, %v1410_v35  ;;  %v1428_v1 = vmax.f32 %v3684_v19, %v1427_v24  ;;  %v4669_v31 = vld [vmem:[%s5067_s8 + $0x18] sm:$0xff]  ;;  %v4681_v15 = vld [vmem:[%s5067_s8 + $0xa8] sm:$0xff]  ;;  %v3450_v35 = vpack.c.bf16 %v4617_v2, %v4612_v53 }
 0x16d   : > { %v2064_v57 = vpop.f32.mrb[8].mxu1  ;;  %v1423_v4 = vrot.slane %v1422_v50, 2  ;;  %v1406_v13 = vrot.slane %v1405_v39, 1  ;;  %v2534_v23 = vsel %vm2533_vm8, %v1388_v55, %v2532_v18  ;;  %v4686_v18 = vld [vmem:[%s5067_s8 + $0x20] sm:$0xff]  ;;  %v3453_v55 = vpack.c.bf16 %v4629_v45, %v4624_v42  ;;  %v4791_v28 = vld [vmem:[%s5067_s8 + $0xe8] sm:$0xff] }
 0x16e   : > { %v2256_v8 = vadd.f32 %v4588_v14, %v2064_v57  ;;  %v2066_v12 = vpop.f32.mrb[9].mxu1  ;;  %v1412_v44 = vrot.slane %v1411_v37, 1  ;;  %v1429_v33 = vrot.slane %v1428_v1, 2  ;;  %v2543_v34 = vsel %vm2533_vm8, %v1394_v61, %v2542_v59  ;;  %v4695_v59 = vld [vmem:[%s5067_s8 + $0x28] sm:$0xff]  ;;  %v4714_v61 = vld [vmem:[%s5067_s8 + $0x30] sm:$0xff] }
 0x16f   : > { %v2257_v25 = vadd.f32 %v4593_v16, %v2066_v12  ;;  %v1407_v38 = vmax.f32 %v1405_v39, %v1406_v13  ;;  %v1424_v41 = vmax.f32 %v1422_v50, %v1423_v4  ;;  %v4700_v39 = vld [vmem:[%s5067_s8 + $0xb0] sm:$0xff]  ;;  %v4705_v50 = vld [vmem:[%s5067_s8 + $0xb8] sm:$0xff]  ;;  %v3456_v57 = vpack.c.bf16 %v4639_v56, %v4634_v17 }
 0x170   : > { %3685 = vtanh.f32 %v2256_v8  ;;  %v1413_v47 = vmax.f32 %v1411_v37, %v1412_v44  ;;  %v1430_v51 = vmax.f32 %v1428_v1, %v1429_v33  ;;  %v4719_v37 = vld [vmem:[%s5067_s8 + $0x38] sm:$0xff]  ;;  %v4724_v1 = vld [vmem:[%s5067_s8 + $0xc0] sm:$0xff]  ;;  %v3458_v8 = vpack.c.bf16 %v4649_v22, %v4644_v48  ;;  %v4745_v44 = vld [vmem:[%s5067_s8 + $0x48] sm:$0xff] }
 0x171   : > { %3687 = vtanh.f32 %v2257_v25  ;;  %v2070_v63 = vpop.f32.mrb[10].mxu1  ;;  %v1425_v21 = vrot.slane %v1424_v41, 1  ;;  %v2536_v26 = vsel %vm2535_vm9, %v1407_v38, %v2534_v23  ;;  %v3460_v12 = vpack.c.bf16 %v4659_v10, %v4654_v30  ;;  %v4735_v23 = vld [vmem:[%s5067_s8 + $0xc8] sm:$0xff]  ;;  %v4740_v25 = vld [vmem:[%s5067_s8 + $0x40] sm:$0xff] }
 0x172   : > { %v2259_v54 = vadd.f32 %v4588_v14, %v2070_v63  ;;  %v2072_v11 = vpop.f32.mrb[11].mxu1  ;;  %v1431_v62 = vrot.slane %v1430_v51, 1  ;;  %v2544_v29 = vsel %vm2535_vm9, %v1413_v47, %v2543_v34  ;;  %v4760_v47 = vld [vmem:[%s5067_s8 + $0xd0] sm:$0xff]  ;;  %v5077_v30 = vpack.c.bf16 %v4669_v31, %v4664_v0 }
 0x173   : > { %v2260_v3 = vadd.f32 %v4593_v16, %v2072_v11  ;;  %v1426_v9 = vmax.f32 %v1424_v41, %v1425_v21  ;;  %v4753_v41 = vrot.slane %v4581_v36, %v1234_v20  ;;  %v4781_v21 = vld [vmem:[%s5067_s8 + $0x58] sm:$0xff] }
 0x174   : > { %3689 = vtanh.f32 %v2259_v54  ;;  %v1432_v46 = vmax.f32 %v1430_v51, %v1431_v62  ;;  %v4765_v51 = vld [vmem:[%s5067_s8 + $0xd8] sm:$0xff]  ;;  %v4800_v62 = vld [vmem:[%s5067_s8 + $0x60] sm:$0xff] }
 0x175   : > { %3691 = vtanh.f32 %v2260_v3  ;;  %v2076_v49 = vpop.f32.mrb[12].mxu1  ;;  %v2538_v19 = vsel %vm2537_vm10, %v1426_v9, %v2536_v26  ;;  %v4786_v26 = vld [vmem:[%s5067_s8 + $0xe0] sm:$0xff] }
 0x176   : > { %v2262_v58 = vadd.f32 %v4588_v14, %v2076_v49  ;;  %v2078_v32 = vpop.f32.mrb[13].mxu1  ;;  %v2545_v27 = vsel %vm2537_vm10, %v1432_v46, %v2544_v29  ;;  %v4805_v29 = vld [vmem:[%s5067_s8 + $0x68] sm:$0xff] }
 0x177   : > { %v2263_v24 = vadd.f32 %v4593_v16, %v2078_v32  ;;  %2625 = vmatprep.mubr.f32.mxu0 %v2545_v27  ;;  %v4814_v32 = vld [vmem:[%s5067_s8 + $0xf0] sm:$0xff] }
 0x178   : > { %3693 = vtanh.f32 %v2262_v58  ;;  %2626 = vmatmul.mubr.f32.vlgmr.msra.gmra.mrb[24].mxu0 %v2538_v19  ;;  %v4819_v19 = vld [vmem:[%s5067_s8 + $0xf8] sm:$0xff] }
 0x179   : > { %3695 = vtanh.f32 %v2263_v24  ;;  %v2082_v4 = vpop.f32.mrb[14].mxu1  ;;  %3448 = vmatpush3.bf16.msra.mxu0 %v3447_v6  ;;  %3396 = vmatprep.mubr.msk.f32.mxu0 %vm3803_vm12, %v5070_v5 }
 0x17a   : > { %v3686_v33 = vpop.eup %3685  ;;  %v2265_v34 = vadd.f32 %v4588_v14, %v2082_v4  ;;  %v2084_v38 = vpop.f32.mrb[15].mxu1  ;;  %3449 = vmatprep.subr.bf16.mxu0 %v5071_v60 }
 0x17b   : > { %v3688_v20 = vpop.eup %3687  ;;  %v2304_v36 = vrot.slane %v3686_v33, 4  ;;  %v2266_v52 = vadd.f32 %v4593_v16, %v2084_v38  ;;  %v4829_v38 = vld [vmem:[%s5067_s8 + $0x70] sm:$0xff] }
 0x17c   : > { %v2310_v53 = vrot.slane %v3688_v20, 4  ;;  %3697 = vtanh.f32 %v2265_v34  ;;  %v4848_v34 = vld [vmem:[%s5067_s8 + $0x100] sm:$0xff] }
 0x17d   : > { %v2305_v9 = vmax.f32 %v3686_v33, %v2304_v36  ;;  %3699 = vtanh.f32 %v2266_v52  ;;  %v2088_v49 = vpop.f32.mrb[16].mxu1  ;;  %3451 = vmatpush3.bf16.msra.mxu0 %v3450_v35  ;;  %v4834_v36 = vld [vmem:[%s5067_s8 + $0x78] sm:$0xff] }
 0x17e   : > { %v3690_v6 = vpop.eup %3689  ;;  %v2311_v24 = vmax.f32 %v3688_v20, %v2310_v53  ;;  %v2268_v27 = vadd.f32 %v4588_v14, %v2088_v49  ;;  %v2090_v4 = vpop.f32.mrb[17].mxu1  ;;  %3452 = vmatprep.subr.bf16.mxu0 %v5071_v60 }
 0x17f   : > { %v3692_v35 = vpop.eup %3691  ;;  %v2306_v20 = vrot.slane %v2305_v9, 2  ;;  %v2323_v52 = vrot.slane %v3690_v6, 4  ;;  %v2269_v53 = vadd.f32 %v4593_v16, %v2090_v4  ;;  %v4853_v4 = vld [vmem:[%s5067_s8 + $0x108] sm:$0xff] }
 0x180   : > { %v2312_v60 = vrot.slane %v2311_v24, 2  ;;  %v2329_v33 = vrot.slane %v3692_v35, 4  ;;  %3701 = vtanh.f32 %v2268_v27 }
 0x181   : > { %v2307_v46 = vmax.f32 %v2305_v9, %v2306_v20  ;;  %v2324_v3 = vmax.f32 %v3690_v6, %v2323_v52  ;;  %3703 = vtanh.f32 %v2269_v53  ;;  %v2094_v5 = vpop.f32.mrb[18].mxu1  ;;  %3455 = vmatpush3.bf16.msk.msra.mxu0 %vm4839_vm14, %v3453_v55 }
 0x182   : > { %v3694_v11 = vpop.eup %3693  ;;  %v2313_v54 = vmax.f32 %v2311_v24, %v2312_v60  ;;  %v2330_v63 = vmax.f32 %v3692_v35, %v2329_v33  ;;  %v2271_v27 = vadd.f32 %v4588_v14, %v2094_v5  ;;  %v2096_v13 = vpop.f32.mrb[19].mxu1  ;;  %3457 = vmatprep.subr.bf16.mxu0 %v3456_v57 }
 0x183   : > { %v3696_v6 = vpop.eup %3695  ;;  %v2308_v20 = vrot.slane %v2307_v46, 1  ;;  %v2325_v52 = vrot.slane %v2324_v3, 2  ;;  %v2342_v53 = vrot.slane %v3694_v11, 4  ;;  %v2272_v2 = vadd.f32 %v4593_v16, %v2096_v13 }
 0x184   : > { %v2314_v60 = vrot.slane %v2313_v54, 1  ;;  %v2331_v42 = vrot.slane %v2330_v63, 2  ;;  %v2348_v45 = vrot.slane %v3696_v6, 4  ;;  %3705 = vtanh.f32 %v2271_v27  ;;  %3397 = vmatmul.mubr.msk.f32.vlgmr.msra.gmra.mrb[26].mxu0 %vm1299_vm3, %v4546_v43 }
 0x185   : > { %v4871_v55 = vmax.f32 %v2307_v46, %v2308_v20  ;;  %v2326_v5 = vmax.f32 %v2324_v3, %v2325_v52  ;;  %v2343_v24 = vmax.f32 %v3694_v11, %v2342_v53  ;;  %3707 = vtanh.f32 %v2272_v2  ;;  %v2100_v33 = vpop.f32.mrb[20].mxu1  ;;  %3459 = vmatpush3.bf16.msra.mxu0 %v3458_v8 }
 0x186   : > { %v3698_v35 = vpop.eup %3697  ;;  %v4875_v9 = vmax.f32 %v2313_v54, %v2314_v60  ;;  %v2332_v13 = vmax.f32 %v2330_v63, %v2331_v42  ;;  %v2349_v58 = vmax.f32 %v3696_v6, %v2348_v45  ;;  %v2274_v17 = vadd.f32 %v4588_v14, %v2100_v33  ;;  %v2102_v56 = vpop.f32.mrb[21].mxu1  ;;  %3461 = vmatprep.subr.bf16.mxu0 %v3460_v12 }
 0x187   : > { %v3700_v57 = vpop.eup %3699  ;;  %v2327_v3 = vrot.slane %v2326_v5, 1  ;;  %v2344_v11 = vrot.slane %v2343_v24, 2  ;;  %v2361_v2 = vrot.slane %v3698_v35, 4  ;;  %v2275_v46 = vadd.f32 %v4593_v16, %v2102_v56 }
 0x188   : > { %v2333_v43 = vrot.slane %v2332_v13, 1  ;;  %v2350_v63 = vrot.slane %v2349_v58, 2  ;;  %v2367_v54 = vrot.slane %v3700_v57, 4  ;;  %3709 = vtanh.f32 %v2274_v17 }
 0x189   : > { %v4885_v27 = vmax.f32 %v2326_v5, %v2327_v3  ;;  %v2345_v6 = vmax.f32 %v2343_v24, %v2344_v11  ;;  %v2362_v20 = vmax.f32 %v3698_v35, %v2361_v2  ;;  %3711 = vtanh.f32 %v2275_v46  ;;  %v2106_v48 = vpop.f32.mrb[22].mxu1  ;;  %3463 = vmatpush3.bf16.msra.mxu0 %v5077_v30 }
 0x18a   : > { %v3702_v22 = vpop.eup %3701  ;;  %v4887_v8 = vmax.f32 %v2332_v13, %v2333_v43  ;;  %v2351_v52 = vmax.f32 %v2349_v58, %v2350_v63  ;;  %v2368_v53 = vmax.f32 %v3700_v57, %v2367_v54  ;;  %v2277_v60 = vadd.f32 %v4588_v14, %v2106_v48  ;;  %v2108_v42 = vpop.f32.mrb[23].mxu1 }
 0x18b   : > { %v3704_v10 = vpop.eup %3703  ;;  %v2346_v12 = vrot.slane %v2345_v6, 1  ;;  %v2363_v45 = vrot.slane %v2362_v20, 2  ;;  %v2380_v5 = vrot.slane %v3702_v22, 4  ;;  %v2278_v24 = vadd.f32 %v4593_v16, %v2108_v42 }
 0x18c   : > { %v5078_v33 = vpack.c.bf16 %v4681_v15, %v4676_v7  ;;  %v2352_v35 = vrot.slane %v2351_v52, 1  ;;  %v2369_v58 = vrot.slane %v2368_v53, 2  ;;  %v2386_v13 = vrot.slane %v3704_v10, 4 }
 0x18d   : > { %3713 = vtanh.f32 %v2277_v60  ;;  %v4897_v14 = vmax.f32 %v2345_v6, %v2346_v12  ;;  %v2364_v17 = vmax.f32 %v2362_v20, %v2363_v45  ;;  %v2381_v56 = vmax.f32 %v3702_v22, %v2380_v5  ;;  %v3374_v0 = vpop.f32.mrb[24].mxu1 }
 0x18e   : > { %3465 = vmatprep.subr.bf16.mxu0 %v5078_v33  ;;  %3715 = vtanh.f32 %v2278_v24  ;;  %v3706_v31 = vpop.eup %3705  ;;  %v2353_v57 = vmax.f32 %v2351_v52, %v2352_v35  ;;  %v2370_v3 = vmax.f32 %v2368_v53, %v2369_v58  ;;  %v2387_v11 = vmax.f32 %v3704_v10, %v2386_v13  ;;  %v2177_v2 = vpop.f32.mrb[25].mxu1 }
 0x18f   : > { %v2261_v16 = vadd.f32 %v3374_v0, %v4753_v41  ;;  %v5079_v7 = vpack.c.bf16 %v4695_v59, %v4686_v18  ;;  %v3708_v15 = vpop.eup %3707  ;;  %v2365_v46 = vrot.slane %v2364_v17, 1  ;;  %v2382_v43 = vrot.slane %v2381_v56, 2 }
 0x190   : > { %v2399_v63 = vrot.slane %v3706_v31, 4  ;;  %v2258_v54 = vadd.f32 %v4753_v41, %v2177_v2  ;;  %v5080_v6 = vpack.c.bf16 %v4705_v50, %v4700_v39  ;;  %v2371_v20 = vrot.slane %v2370_v3, 1 }
 0x191   : > { %3467 = vmatpush3.bf16.msra.mxu0 %v5079_v7  ;;  %v2388_v48 = vrot.slane %v2387_v11, 2  ;;  %v2405_v22 = vrot.slane %v3708_v15, 4  ;;  %3717 = vtanh.f32 %v2261_v16  ;;  %v4907_v52 = vmax.f32 %v2364_v17, %v2365_v46  ;;  %v3377_v18 = vpop.f32.mrb[26].mxu1 }
 0x192   : > { %3469 = vmatprep.subr.bf16.mxu0 %v5080_v6  ;;  %v2383_v53 = vmax.f32 %v2381_v56, %v2382_v43  ;;  %v2400_v60 = vmax.f32 %v3706_v31, %v2399_v63  ;;  %3719 = vtanh.f32 %v2258_v54  ;;  %v3710_v59 = vpop.eup %3709  ;;  %v2267_v10 = vadd.f32 %v3377_v18, %v4753_v41  ;;  %v2187_v12 = vpop.f32.mrb[27].mxu1 }
 0x193   : > { %v2389_v42 = vmax.f32 %v2387_v11, %v2388_v48  ;;  %v2406_v30 = vmax.f32 %v3708_v15, %v2405_v22  ;;  %v5081_v39 = vpack.c.bf16 %v4719_v37, %v4714_v61  ;;  %v2372_v50 = vmax.f32 %v2370_v3, %v2371_v20  ;;  %v3712_v45 = vpop.eup %3711 }
 0x194   : > { %v2384_v5 = vrot.slane %v2383_v53, 1  ;;  %v2401_v24 = vrot.slane %v2400_v60, 2  ;;  %v2418_v33 = vrot.slane %v3710_v59, 4  ;;  %v2264_v35 = vadd.f32 %v4753_v41, %v2187_v12 }
 0x195   : > { %3471 = vmatpush3.bf16.msra.mxu0 %v5081_v39  ;;  %v5082_v58 = vpack.c.bf16 %v4735_v23, %v4724_v1  ;;  %v2407_v13 = vrot.slane %v2406_v30, 2  ;;  %v2424_v17 = vrot.slane %v3712_v45, 4  ;;  %3721 = vtanh.f32 %v2267_v10  ;;  %v3380_v61 = vpop.f32.mrb[28].mxu1 }
 0x196   : > { %v2390_v56 = vrot.slane %v2389_v42, 1  ;;  %v2402_v0 = vmax.f32 %v2400_v60, %v2401_v24  ;;  %v2419_v31 = vmax.f32 %v3710_v59, %v2418_v33  ;;  %3723 = vtanh.f32 %v2264_v35  ;;  %v2197_v2 = vpop.f32.mrb[29].mxu1 }
 0x197   : > { %3473 = vmatprep.subr.bf16.mxu0 %v5082_v58  ;;  %v2777_v37 = vsel %vm2525_vm4, %v4887_v8, %v4875_v9  ;;  %v3714_v3 = vpop.eup %3713  ;;  %v2425_v11 = vmax.f32 %v3712_v45, %v2424_v17  ;;  %v2273_v16 = vadd.f32 %v3380_v61, %v4753_v41  ;;  %v5083_v1 = vpack.c.bf16 %v4745_v44, %v4740_v25 }
 0x198   : > { %v2391_v23 = vmax.f32 %v2389_v42, %v2390_v56  ;;  %v2408_v7 = vmax.f32 %v2406_v30, %v2407_v13  ;;  %v3716_v15 = vpop.eup %3715  ;;  %v2420_v46 = vrot.slane %v2419_v31, 2  ;;  %v2437_v43 = vrot.slane %v3714_v3, 4 }
 0x199   : > { %3475 = vmatpush3.bf16.msra.mxu0 %v5083_v1  ;;  %v2270_v63 = vadd.f32 %v4753_v41, %v2197_v2  ;;  %v5084_v54 = vpack.c.bf16 %v4765_v51, %v4760_v47  ;;  %v2778_v9 = vsel %vm2527_vm5, %v2353_v57, %v2777_v37  ;;  %v2443_v8 = vrot.slane %v3716_v15, 4  ;;  %v3383_v25 = vpop.f32.mrb[30].mxu1 }
 0x19a   : > { %3725 = vtanh.f32 %v2273_v16  ;;  %v2409_v6 = vrot.slane %v2408_v7, 1  ;;  %v2426_v20 = vrot.slane %v2425_v11, 2  ;;  %v2779_v44 = vsel %vm2529_vm6, %v2372_v50, %v2778_v9  ;;  %v2207_v59 = vpop.f32.mrb[31].mxu1 }
 0x19b   : > { %3477 = vmatprep.subr.bf16.mxu0 %v5084_v54  ;;  %3727 = vtanh.f32 %v2270_v63  ;;  %v4930_v48 = vmax.f32 %v2383_v53, %v2384_v5  ;;  %v2403_v22 = vrot.slane %v2402_v0, 1  ;;  %v3718_v60 = vpop.eup %3717  ;;  %v2279_v18 = vadd.f32 %v3383_v25, %v4753_v41 }
 0x19c   : > { %v5085_v47 = vpack.c.bf16 %v4781_v21, %v4770_v40  ;;  %v2410_v51 = vmax.f32 %v2408_v7, %v2409_v6  ;;  %v2427_v57 = vmax.f32 %v2425_v11, %v2426_v20  ;;  %v2444_v42 = vmax.f32 %v3716_v15, %v2443_v8  ;;  %v3720_v30 = vpop.eup %3719 }
 0x19d   : > { %v2335_v10 = vsel %vm1299_vm3, %v3718_v60, -inf  ;;  %v2276_v12 = vadd.f32 %v4753_v41, %v2207_v59  ;;  %v5086_v53 = vpack.c.bf16 %v4791_v28, %v4786_v26  ;;  %v2780_v39 = vsel %vm2531_vm7, %v2391_v23, %v2779_v44 }
 0x19e   : > { %3479 = vmatpush3.bf16.msra.mxu0 %v5085_v47  ;;  %v4942_v50 = vmax.f32 %v2402_v0, %v2403_v22  ;;  %v2336_v45 = vrot.slane %v2335_v10, 4  ;;  %v2316_v40 = vsel %vm1299_vm3, %v3720_v30, -inf  ;;  %3729 = vtanh.f32 %v2279_v18 }
 0x19f   : > { %3481 = vmatprep.subr.bf16.mxu0 %v5086_v53  ;;  %v2428_v21 = vrot.slane %v2427_v57, 1  ;;  %v2317_v5 = vrot.slane %v2316_v40, 4  ;;  %3731 = vtanh.f32 %v2276_v12  ;;  %v2445_v24 = vrot.slane %v2444_v42, 2  ;;  %v3722_v35 = vpop.eup %3721 }
 0x1a0   : > { %v2781_v33 = vsel %vm2533_vm8, %v2410_v51, %v2780_v39  ;;  %v2337_v41 = vmax.f32 %v2335_v10, %v2336_v45  ;;  %v5087_v26 = vpack.c.bf16 %v4805_v29, %v4800_v62  ;;  %v2421_v58 = vmax.f32 %v2419_v31, %v2420_v46  ;;  %v3724_v17 = vpop.eup %3723 }
 0x1a1   : > { %v2429_v28 = vmax.f32 %v2427_v57, %v2428_v21  ;;  %v2438_v13 = vmax.f32 %v3714_v3, %v2437_v43  ;;  %v2318_v56 = vmax.f32 %v2316_v40, %v2317_v5  ;;  %v2373_v0 = vsel %vm1299_vm3, %v3722_v35, -inf }
 0x1a2   : > { %3483 = vmatpush3.bf16.msra.mxu0 %v5087_v26  ;;  %v5088_v61 = vpack.c.bf16 %v4819_v19, %v4814_v32  ;;  %v2446_v37 = vmax.f32 %v2444_v42, %v2445_v24  ;;  %v2770_v11 = vsel %vm2525_vm4, %v4885_v27, %v4871_v55  ;;  %v2338_v16 = vrot.slane %v2337_v41, 2 }
 0x1a3   : > { %v2374_v2 = vrot.slane %v2373_v0, 4  ;;  %v2354_v62 = vsel %vm1299_vm3, %v3724_v17, -inf  ;;  %v2782_v29 = vsel %vm2535_vm9, %v2429_v28, %v2781_v33  ;;  %v2319_v31 = vrot.slane %v2318_v56, 2 }
 0x1a4   : > { %3485 = vmatprep.subr.bf16.mxu0 %v5088_v61  ;;  %v2355_v3 = vrot.slane %v2354_v62, 4  ;;  %v2447_v1 = vrot.slane %v2446_v37, 1  ;;  %v2422_v23 = vrot.slane %v2421_v58, 1  ;;  %v3726_v7 = vpop.eup %3725  ;;  %v2339_v15 = vmax.f32 %v2337_v41, %v2338_v16 }
 0x1a5   : > { %v2375_v46 = vmax.f32 %v2373_v0, %v2374_v2  ;;  %v5089_v32 = vpack.c.bf16 %v4834_v36, %v4829_v38  ;;  %v2439_v19 = vrot.slane %v2438_v13, 2  ;;  %v2771_v55 = vsel %vm2527_vm5, %v4897_v14, %v2770_v11  ;;  %v3728_v27 = vpop.eup %3727 }
 0x1a6   : > { %v2320_v43 = vmax.f32 %v2318_v56, %v2319_v31  ;;  %v2356_v63 = vmax.f32 %v2354_v62, %v2355_v3  ;;  %v2411_v54 = vsel %vm1299_vm3, %v3726_v7, -inf  ;;  %v2448_v9 = vmax.f32 %v2446_v37, %v2447_v1 }
 0x1a7   : > { %3487 = vmatpush3.bf16.msra.mxu0 %v5089_v32  ;;  %v5090_v8 = vmov 0.0|0.0   ;;  %v2340_v6 = vrot.slane %v2339_v15, 1  ;;  %v2376_v20 = vrot.slane %v2375_v46, 2  ;;  %v2412_v25 = vrot.slane %v2411_v54, 4 }
 0x1a8   : > { %3488 = vmatprep.subr.bf16.mxu0 %v5090_v8  ;;  %v2392_v44 = vsel %vm1299_vm3, %v3728_v27, -inf  ;;  %v2321_v22 = vrot.slane %v2320_v43, 1  ;;  %v2357_v38 = vrot.slane %v2356_v63, 2  ;;  %v2783_v60 = vsel %vm2537_vm10, %v2448_v9, %v2782_v29  ;;  %v3730_v18 = vpop.eup %3729  ;;  %v2738_v9 = vld [vmem:[%s5067_s8 + $0x128] sm:$0xf] }
 0x1a9   : > { %v2393_v36 = vrot.slane %v2392_v44, 4  ;;  %v2341_v14 = vmax.f32 %v2339_v15, %v2340_v6  ;;  %v2377_v59 = vmax.f32 %v2375_v46, %v2376_v20  ;;  %v2413_v47 = vmax.f32 %v2411_v54, %v2412_v25  ;;  %2862 = vmatprep.mubr.f32.mxu0 %v2783_v60  ;;  %v3732_v57 = vpop.eup %3731  ;;  %v2737_v54 = vld [vmem:[%s5067_s8 + $0x120] sm:$0xff] }
 0x1aa   : > { %v2423_v51 = vmax.f32 %v2421_v58, %v2422_v23  ;;  %v2322_v42 = vmax.f32 %v2320_v43, %v2321_v22  ;;  %v2358_v30 = vmax.f32 %v2356_v63, %v2357_v38  ;;  %v2449_v12 = vsel %vm1299_vm3, %v3730_v18, -inf  ;;  %v3150_v60 = vld [vmem:[%s5066_s7] ss:$0 sm:$0xff] }
 0x1ab   : > { %v2394_v10 = vmax.f32 %v2392_v44, %v2393_v36  ;;  %v2378_v53 = vrot.slane %v2377_v59, 1  ;;  %v2414_v39 = vrot.slane %v2413_v47, 2  ;;  %v2450_v45 = vrot.slane %v2449_v12, 4 }
 0x1ac   : > { %v2430_v40 = vsel %vm1299_vm3, %v3732_v57, -inf  ;;  %v2359_v21 = vrot.slane %v2358_v30, 1  ;;  %v2440_v33 = vmax.f32 %v2438_v13, %v2439_v19  ;;  %v2772_v28 = vsel %vm2529_vm6, %v4907_v52, %v2771_v55  ;;  %v2735_v52 = vld [vmem:[%s5067_s8 + $0x110] sm:$0xff] }
 0x1ad   : > { %v2395_v5 = vrot.slane %v2394_v10, 2  ;;  %v2431_v24 = vrot.slane %v2430_v40, 4  ;;  %v2379_v35 = vmax.f32 %v2377_v59, %v2378_v53  ;;  %v2415_v41 = vmax.f32 %v2413_v47, %v2414_v39 }
 0x1ae   : > { %v2451_v26 = vmax.f32 %v2449_v12, %v2450_v45  ;;  %v2360_v58 = vmax.f32 %v2358_v30, %v2359_v21  ;;  %v2441_v0 = vrot.slane %v2440_v33, 1  ;;  %v2773_v61 = vsel %vm2531_vm7, %v4930_v48, %v2772_v28  ;;  %v2736_v48 = vld [vmem:[%s5067_s8 + $0x118] sm:$0xff]  ;;  %v3153_v30 = vld [vmem:[%s5068_s9] ss:$0 sm:$0xff] }
 0x1af   : > { %v2396_v17 = vmax.f32 %v2394_v10, %v2395_v5  ;;  %v2432_v56 = vmax.f32 %v2430_v40, %v2431_v24  ;;  %v2416_v37 = vrot.slane %v2415_v41, 1  ;;  %v2784_v16 = vsel %vm2525_vm4, %v2341_v14, %v2322_v42 }
 0x1b0   : > { %v2452_v11 = vrot.slane %v2451_v26, 2  ;;  %v2442_v13 = vmax.f32 %v2440_v33, %v2441_v0  ;;  %v2774_v29 = vsel %vm2533_vm8, %v4942_v50, %v2773_v61  ;;  %v2785_v1 = vsel %vm2527_vm5, %v2360_v58, %v2784_v16 }
 0x1b1   : > { %v2397_v2 = vrot.slane %v2396_v17, 1  ;;  %v2433_v62 = vrot.slane %v2432_v56, 2  ;;  %v2775_v31 = vsel %vm2535_vm9, %v2423_v51, %v2774_v29  ;;  %v2786_v46 = vsel %vm2529_vm6, %v2379_v35, %v2785_v1 }
 0x1b2   : > { %v2453_v3 = vmax.f32 %v2451_v26, %v2452_v11  ;;  %v2776_v23 = vsel %vm2537_vm10, %v2442_v13, %v2775_v31  ;;  %v2417_v50 = vmax.f32 %v2415_v41, %v2416_v37  ;;  %v5091_v19 = vpack.c.bf16 %v4853_v4, %v4848_v34 }
 0x1b3   : > { %v2398_v7 = vmax.f32 %v2396_v17, %v2397_v2  ;;  %v2434_v15 = vmax.f32 %v2432_v56, %v2433_v62  ;;  %2863 = vmatmul.mubr.f32.vlgmr.msra.gmra.mrb[28].mxu0 %v2776_v23  ;;  %v3492_v55 = vpack.c.bf16 %v2736_v48, %v2735_v52  ;;  %v5092_v27 = vmov 0.0  }
 0x1b4   : > { %v2454_v32 = vrot.slane %v2453_v3, 1  ;;  %3490 = vmatpush3.bf16.msra.mxu0 %v5091_v19  ;;  %3411 = vmatprep.mubr.msk.f32.mxu0 %vm3803_vm12, %v5092_v27  ;;  %v3495_v20 = vpack.c.bf16 %v2738_v9, %v2737_v54 }
 0x1b5   : > { %v2435_v43 = vrot.slane %v2434_v15, 1  ;;  %v2787_v63 = vsel %vm2531_vm7, %v2398_v7, %v2786_v46  ;;  %3491 = vmatprep.subr.bf16.mxu0 %v5090_v8 }
 0x1b6   : > { %v2788_v34 = vsel %vm2533_vm8, %v2417_v50, %v2787_v63  ;;  %v2455_v6 = vmax.f32 %v2453_v3, %v2454_v32 }
 0x1b7   : > { %v2436_v4 = vmax.f32 %v2434_v15, %v2435_v43 }
 0x1b8   : > { %3493 = vmatpush3.bf16.msra.mxu0 %v3492_v55 }
 0x1b9   : > { %v2789_v25 = vsel %vm2535_vm9, %v2436_v4, %v2788_v34  ;;  %3494 = vmatprep.subr.bf16.mxu0 %v5090_v8 }
 0x1ba   : > { %v2790_v44 = vsel %vm2537_vm10, %v2455_v6, %v2789_v25 }
 0x1bc   : > { %3497 = vmatpush3.bf16.msk.msra.mxu0 %vm4839_vm14, %v3495_v20 }
 0x1bf   : > { %3412 = vmatmul.mubr.msk.f32.vlgmr.msra.gmra.mrb[30].mxu0 %vm1299_vm3, %v2790_v44 }
 0x24b   : > { %v3248_v22 = vpop.f32.mrb[24].mxu0 }
 0x24c   : > { %v3249_v38 = vpop.f32.mrb[25].mxu0 }
 0x24d   : > { %v3250_v36 = vadd.f32 %v3249_v38, %v3248_v22 }
 0x24f   : > { %v2628_v18 = vadd.f32 %v3250_v36, %v3150_v60 }
 0x257   : > { %v2697_v14 = vpop.f32.mrb[26].mxu0 }
 0x258   : > { %v2698_v59 = vadd.f32 %v2697_v14, %v2628_v18  ;;  %v3398_v47 = vpop.f32.mrb[27].mxu0 }
 0x25a   : > { %v2943_v8 = vmul.f32 %v2698_v59, %v2698_v59 }
 0x25c   : > { %v2944_v51 = vsel %vm2939_vm15, %v2943_v8, 0.0 }
 0x25d   : > { %2945 = vadd.xlane.f32.xlu0 %v2944_v51 }
 0x286   : > { %v3290_v57 = vpop.f32.mrb[28].mxu0 }
 0x287   : > { %v3291_v49 = vpop.f32.mrb[29].mxu0 }
 0x288   : > { %v3292_v42 = vadd.f32 %v3291_v49, %v3290_v57 }
 0x28a   : > { %v2865_v10 = vadd.f32 %v3292_v42, %v3153_v30 }
 0x292   : > { %v2934_v12 = vpop.f32.mrb[30].mxu0 }
 0x293   : > { %v2935_v53 = vadd.f32 %v2934_v12, %v2865_v10  ;;  %v3413_v39 = vpop.f32.mrb[31].mxu0 }
 0x295   : > { %v2947_v45 = vmul.f32 %v2935_v53, %v2935_v53  ;;  %v2938_v40 = vmul.f32 %v2935_v53, %v2698_v59 }
 0x297   : > { %v2948_v21 = vsel %vm2939_vm15, %v2947_v45, 0.0  ;;  %v2940_v5 = vsel %vm2939_vm15, %v2938_v40, 0.0 }
 0x298   : > { %2949 = vadd.xlane.f32.xlu0 %v2948_v21  ;;  %2941 = vadd.xlane.f32.xlu1 %v2940_v5 }
 0x2ea   : > { %v2946_v24 = vpop.xlane.xlu0 %2945 }
 0x2eb   : > { %v2951_v33 = vmax.f32 %v2946_v24, 1e-24 }
 0x2ed   : > { %3733 = vrsqrt.f32 %v2951_v33 }
 0x2f7   : > { %v3734_v28 = vpop.eup %3733 }
 0x325   : > { %v2950_v35 = vpop.xlane.xlu0 %2949  ;;  %v2942_v26 = vpop.xlane.xlu1 %2941 }
 0x326   : > { %v2954_v41 = vmax.f32 %v2950_v35, 1e-24  ;;  %v2953_v58 = vmul.f32 %v3734_v28, %v2942_v26 }
 0x328   : > { %3735 = vrsqrt.f32 %v2954_v41 }
 0x332   : > { %v3736_v17 = vpop.eup %3735 }
 0x333   : > { %v2956_v56 = vmul.f32 %v3736_v17, %v2953_v58 }
 0x335   : > { %2957 = vst [vmem:[%s373_s21] sm:$0xff] %v2956_v56 }
 0x336   : > { %3750 = shalt.err (!%p3747_p3)
}
 0x337   : > { %s3751_s12 = scalar_lea.hbm %s5017_s28, 128  ;;  %s3755_s27 = scalar_lea.hbm %s5069_s10, 256 }
 0x338   : > { %p3752_p4 = scmp.ne.s32.totalorder %s5017_s28, %s3751_s12  ;;  %p3756_p9 = scmp.lt.u32.totalorder %s5017_s28, %s5069_s10 }
 0x339   : > { %p3757_p10 = scmp.lt.u32.totalorder %s3755_s27, %s3751_s12  ;;  %p3759_p12 = scmp.lt.u32.totalorder %s3751_s12, %s5017_s28 }
 0x33a   : > { %p3753_p7 = pnand %p3752_p4, %p3899_p5 }
 0x33b   : > { %p3758_p11 = por %p3757_p10, %p3756_p9 }
 0x33c   : > { %p3754_p8 = pneg %p3753_p7 }
 0x33d   : > { %p3760_p13 = por %p3759_p12, %p3758_p11 }
 0x33f   : > { %p3761_p0 = pnand %p3760_p13, %p3754_p8 }
 0x341   : > { %3764 = shalt.err (!%p3761_p0)
}
 0x342   : > { %3594 = dma.vmem_to_hbm [thread:$0]  (%p3899_p5), %s5019_s26, 128, %s5017_s28, %s2959_s30  }
 0x343 PF: > { %p3600_p1 = scmp.ge.s32.totalorder %s3799_s16, 2  ;;  %s2984_s29 = sand.u32 1, %s3787_s13  }
 0x344   : > { %s2985_s11 = scalar_lea.sflag [#allocation3], %s2984_s29 }
 0x345   : > { %p3597_p2 = pnand %p3600_p1, %p3903_p6 }
 0x347   : > { %3782 = dma.done.wait (!%p3597_p2), %s2985_s11, 128  }
 0x348   : > { %3784 = vsyncadd (!%p3597_p2), %s2985_s11, 4294967168  ;;  %p20_p3 = scmp.ge.s32.totalorder %s3886_s19, 4   ;;  %s5093_s13 = smov %s3791_s14 }
 0x349   : > { %s5094_s14 = smov %s3795_s15  ;;  %s5095_s15 = smov %s3897_s22 }
 0x34a   : > { %s5096_s16 = smov %s3886_s19  ;;  %22 = sbr.rel (!%p20_p3) target bundleno = 3 (0x3), region = 98 }
 0x351   :  { %2990 = vsyncpa [#allocation3], 1 }
 0x352   :  { %2992 = vsyncpa [#allocation3 + $0x1], 1 }

</bundles_post_ra>
